<compile_context>
chip_gen: v7x
topology: tpu7x:2x2x1
jax: 0.10.0
libtpu: 0.0.40
codegen_flags: <defaults>
</compile_context>

<pallas_src>
import functools

import jax
import jax.numpy as jnp
from jax import lax
from jax.experimental import pallas as pl
from jax.experimental.pallas import tpu as pltpu

EPS = 1e-5
OUT_LANES = 128          # lane-dense padded output width (num_classes <= 128)


def _sigmoid(x):
    # sigmoid(x) = 0.5 * tanh(0.5*x) + 0.5  -> one EUP push instead of exp+div
    return 0.5 * jnp.tanh(0.5 * x) + 0.5


# ---------------------------------------------------------------------------
# Single fused kernel: BatchNorm1d(2) + 2-layer LSTM + fc2
# ---------------------------------------------------------------------------

def fused_lstm_model_kernel(x_ref, bn_ref, w_ref, b_ref, fcw_ref, out_ref,
                            *, N, NP, T, D, H):
    # x_ref:   (T*NP, D)      VMEM, channel-major, NP-row padded per timestep
    # bn_ref:  (2*T,)         SMEM  [gamma_0, gamma_1, beta_0, beta_1]
    # w_ref:   (D+3H, 4H)     VMEM  [w_ih_0; w_hh_0; w_ih_1; w_hh_1] (pre-T)
    # b_ref:   (3, 4H)        VMEM  row0=b_l0, row1=b_l1, row2[:128]=fc_b
    # fcw_ref: (H, OUT_LANES) VMEM  fc2 weight, lane-padded
    # out_ref: (T*NP, OUT_LANES) VMEM
    x = x_ref[...]

    # --- BatchNorm1d(2): training-mode batch stats, biased variance ---------
    # Padding rows are zero, so full 8-row-block sums equal real-row sums.
    inv_cnt = 1.0 / float(N * D)
    scale_c, shift_c = [], []
    for c in range(T):                              # T == 2, static unroll
        blk = x[c * NP:(c + 1) * NP, :]             # (NP, D) tile-aligned
        s1 = jnp.sum(blk)
        s2 = jnp.sum(blk * blk)
        m = s1 * inv_cnt
        v = s2 * inv_cnt - m * m                    # biased variance
        sc = bn_ref[c] * lax.rsqrt(v + EPS)
        scale_c.append(sc)
        shift_c.append(bn_ref[T + c] - m * sc)
    row = lax.broadcasted_iota(jnp.int32, (T * NP, 1), 0)
    scale = jnp.where(row < NP, scale_c[0], scale_c[1])
    shift = jnp.where(row < NP, shift_c[0], shift_c[1])
    xb = x * scale + shift                          # (T*NP, D)

    # --- weight / bias views (all row/lane offsets are tile-aligned) --------
    w_ih_0 = w_ref[0:D, :]
    w_hh_0 = w_ref[D:D + H, :]
    w_ih_1 = w_ref[D + H:D + 2 * H, :]
    w_hh_1 = w_ref[D + 2 * H:D + 3 * H, :]
    b0 = b_ref[0:1, :]
    b1 = b_ref[1:2, :]
    fcb = b_ref[2:3, 0:OUT_LANES]
    fcw = fcw_ref[...]

    def gates_to_hc(gates, c_prev):
        # PyTorch gate order [i, f, g, o]; c_prev is None at t=0 (c == 0).
        i = _sigmoid(gates[:, 0 * H:1 * H])
        g = jnp.tanh(gates[:, 2 * H:3 * H])
        o = _sigmoid(gates[:, 3 * H:4 * H])
        if c_prev is None:
            c_new = i * g                           # skip f-gate: c_prev == 0
        else:
            f = _sigmoid(gates[:, 1 * H:2 * H])
            c_new = f * c_prev + i * g
        return o * jnp.tanh(c_new), c_new

    # --- LSTM layer 0: input projection for both timesteps in one matmul ----
    gx0 = jnp.dot(xb, w_ih_0, preferred_element_type=jnp.float32) + b0
    h0_a, c0_a = gates_to_hc(gx0[0:NP, :], None)                    # t = 0
    g1 = gx0[NP:2 * NP, :] + jnp.dot(h0_a, w_hh_0,
                                     preferred_element_type=jnp.float32)
    h1_a, _ = gates_to_hc(g1, c0_a)                                 # t = 1

    # --- LSTM layer 1 + fc2: per-timestep matmuls (no concat / scratch);
    #     the t=0 path overlaps the layer-0 / layer-1 t=1 recurrences. -------
    gx1_0 = jnp.dot(h0_a, w_ih_1, preferred_element_type=jnp.float32) + b1
    h0_b, c0_b = gates_to_hc(gx1_0, None)                           # t = 0
    out_ref[0:NP, :] = (jnp.dot(h0_b, fcw,
                                preferred_element_type=jnp.float32) + fcb)

    gx1_1 = jnp.dot(h1_a, w_ih_1, preferred_element_type=jnp.float32) + b1
    g1b = gx1_1 + jnp.dot(h0_b, w_hh_1, preferred_element_type=jnp.float32)
    h1_b, _ = gates_to_hc(g1b, c0_b)                                # t = 1
    out_ref[NP:2 * NP, :] = (jnp.dot(h1_b, fcw,
                                     preferred_element_type=jnp.float32) + fcb)


# ---------------------------------------------------------------------------
# Wrapper
# ---------------------------------------------------------------------------

def lstm_model_forward(x, params):
    N, T, D = x.shape
    assert T == 2, "BatchNorm1d(2) forces seq length (channel dim) == 2"
    H = params["hidden_dim"]
    nc = params["num_classes"]
    NP = max(8, -(-N // 8) * 8)      # per-timestep rows padded to sublane tile

    # Wrapper-side layout: channel-major, zero-padded (T, NP, D) -> (T*NP, D),
    # so the kernel only sees tile-aligned 2-D slabs.
    x_cm = jnp.transpose(x, (1, 0, 2)).astype(jnp.float32)          # (T, N, D)
    x_pack = jnp.pad(x_cm, ((0, 0), (0, NP - N), (0, 0))).reshape(T * NP, D)

    kernel = functools.partial(fused_lstm_model_kernel,
                               N=N, NP=NP, T=T, D=D, H=H)

    # VMEM budget from the actual footprint (plus double-buffer + headroom).
    operand_bytes = 4 * (x_pack.size + params["w_slab"].size
                         + params["b_slab"].size + params["fc_w"].size
                         + T * NP * OUT_LANES)
    vmem_limit = max(2 * int(operand_bytes) + (4 << 20), 8 << 20)

    vmem = pl.BlockSpec(memory_space=pltpu.MemorySpace.VMEM)
    smem = pl.BlockSpec(memory_space=pltpu.MemorySpace.SMEM)

    out_flat = pl.pallas_call(
        kernel,
        out_shape=jax.ShapeDtypeStruct((T * NP, OUT_LANES), jnp.float32),
        in_specs=[vmem, smem, vmem, vmem, vmem],   # x, bn, w_slab, b_slab, fc_w
        out_specs=vmem,
        compiler_params=pltpu.CompilerParams(vmem_limit_bytes=vmem_limit),
    )(x_pack, params["bn"], params["w_slab"], params["b_slab"], params["fc_w"])

    # kernel rows are [t*NP + n]; slice real rows / classes back out.
    out = out_flat.reshape(T, NP, OUT_LANES)[:, :N, :nc]
    out = jnp.transpose(out, (1, 0, 2))            # (N, T, num_classes)

    regu_sum = []  # matches the PyTorch module (always empty)
    return out, regu_sum


# ---------------------------------------------------------------------------
# Deterministic parameter init (synthetic, PyTorch-like uniform init) with
# weights pre-packed into the kernel's VMEM slabs.
# ---------------------------------------------------------------------------

def init_params(key, num_classes, input_dim, hidden_dim):
    H, D = hidden_dim, input_dim
    assert H == 128, "fc2 is Linear(128, num_classes) => hidden_dim must be 128"
    assert num_classes <= OUT_LANES
    bound = 1.0 / jnp.sqrt(jnp.float32(H))
    keys = jax.random.split(key, 10)
    params = {"hidden_dim": H, "num_classes": num_classes}

    # BatchNorm1d(2): weight=1, bias=0 at init -> SMEM [g0, g1, b0, b1]
    params["bn"] = jnp.concatenate([jnp.ones((2,), jnp.float32),
                                    jnp.zeros((2,), jnp.float32)])

    # LSTM layer 0 (D -> H) and layer 1 (H -> H); pre-transposed and packed.
    d_ins = [D, H]
    w_rows, biases = [], []
    k = 0
    for layer in range(2):
        d_in = d_ins[layer]
        w_ih = jax.random.uniform(keys[k], (4 * H, d_in), jnp.float32, -bound, bound); k += 1
        w_hh = jax.random.uniform(keys[k], (4 * H, H), jnp.float32, -bound, bound); k += 1
        b_ih = jax.random.uniform(keys[k], (4 * H,), jnp.float32, -bound, bound); k += 1
        b_hh = jax.random.uniform(keys[k], (4 * H,), jnp.float32, -bound, bound); k += 1
        w_rows += [jnp.transpose(w_ih), jnp.transpose(w_hh)]   # (d_in,4H),(H,4H)
        biases.append(b_ih + b_hh)
    params["w_slab"] = jnp.concatenate(w_rows, axis=0)         # (D + 3H, 4H)

    # fc2: Linear(128, num_classes) -> lane-padded weight / bias.
    fbound = 1.0 / jnp.sqrt(jnp.float32(H))
    fc_w = jax.random.uniform(keys[k], (num_classes, H), jnp.float32, -fbound, fbound); k += 1
    fc_b = jax.random.uniform(keys[k], (num_classes,), jnp.float32, -fbound, fbound); k += 1
    params["fc_w"] = (jnp.zeros((H, OUT_LANES), jnp.float32)
                      .at[:, :num_classes].set(jnp.transpose(fc_w)))

    # Bias slab (3, 4H): rows 0/1 = fused LSTM biases, row 2 = fc_b (padded).
    fcb_row = jnp.zeros((4 * H,), jnp.float32).at[:num_classes].set(fc_b)
    params["b_slab"] = jnp.stack([biases[0], biases[1], fcb_row], axis=0)
    return params


# ---------------------------------------------------------------------------
# Pure-JAX reference (same packed params) for a correctness spot-check.
# ---------------------------------------------------------------------------

def reference_forward(x, params):
    N, T, D = x.shape
    H = params["hidden_dim"]
    nc = params["num_classes"]
    gamma = params["bn"][:T].reshape(1, T, 1)
    beta = params["bn"][T:].reshape(1, T, 1)
    m = jnp.mean(x, axis=(0, 2), keepdims=True)
    v = jnp.mean((x - m) ** 2, axis=(0, 2), keepdims=True)
    xb = (x - m) * gamma / jnp.sqrt(v + EPS) + beta

    w = params["w_slab"]
    w_ih = [w[0:D], w[D + H:D + 2 * H]]
    w_hh = [w[D:D + H], w[D + 2 * H:D + 3 * H]]
    b = [params["b_slab"][0], params["b_slab"][1]]
    fc_w = params["fc_w"][:, :nc]
    fc_b = params["b_slab"][2][:nc]

    def cell(x_t, h, c, layer):
        g = x_t @ w_ih[layer] + h @ w_hh[layer] + b[layer]
        i = jax.nn.sigmoid(g[:, 0:H]); f = jax.nn.sigmoid(g[:, H:2 * H])
        gg = jnp.tanh(g[:, 2 * H:3 * H]); o = jax.nn.sigmoid(g[:, 3 * H:4 * H])
        c = f * c + i * gg
        return o * jnp.tanh(c), c

    seq = [xb[:, t, :] for t in range(T)]
    for layer in range(2):
        h = jnp.zeros((N, H), jnp.float32)
        c = jnp.zeros((N, H), jnp.float32)
        outs = []
        for t in range(T):
            h, c = cell(seq[t], h, c, layer)
            outs.append(h)
        seq = outs
    return jnp.stack(seq, axis=1) @ fc_w + fc_b          # (N, T, nc)


if __name__ == "__main__":
    num_classes = 10
    input_dim = 16
    hidden_dim = 128   # fc2 is Linear(128, num_classes) => hidden_dim must be 128
    batch = 2

    key = jax.random.PRNGKey(0)
    kx, kp = jax.random.split(key)
    x = jax.random.normal(kx, (batch, 2, input_dim), jnp.float32)  # (N, C=2, L)

    params = init_params(kp, num_classes, input_dim, hidden_dim)

    out, regu_sum = lstm_model_forward(x, params)
    out = jax.block_until_ready(out)
    assert out.shape == (batch, 2, num_classes)
    assert regu_sum == []

    ref = reference_forward(x, params)
    assert bool(jnp.allclose(out, ref, rtol=2e-2, atol=2e-2)), "mismatch vs reference"

    print("KERNEL_OK")
</pallas_src>

<mosaic_0001>
module attributes {stable_mosaic.version = 11 : i64} {
  func.func @fused_lstm_model_kernel(%arg0: memref<16x16xf32, #tpu.memory_space<vmem>>, %arg1: memref<4xf32, #tpu.memory_space<smem>>, %arg2: memref<400x512xf32, #tpu.memory_space<vmem>>, %arg3: memref<3x512xf32, #tpu.memory_space<vmem>>, %arg4: memref<128x128xf32, #tpu.memory_space<vmem>>, %arg5: memref<16x128xf32, #tpu.memory_space<vmem>>) attributes {dimension_semantics = [], scalar_prefetch = 0 : i64, scratch_operands = 0 : i64, tpu.core_type = #tpu.core_type<tc>} {
    %c0 = arith.constant 0 : index
    %c0_0 = arith.constant 0 : index
    %0 = vector.load %arg0[%c0, %c0_0] : memref<16x16xf32, #tpu.memory_space<vmem>>, vector<16x16xf32>
    %1 = vector.extract_strided_slice %0 {offsets = [0, 0], sizes = [8, 16], strides = [1, 1]} : vector<16x16xf32> to vector<8x16xf32>
    %2 = vector.shape_cast %1 : vector<8x16xf32> to vector<1x8x16xf32>
    %cst = arith.constant dense<0.000000e+00> : vector<1xf32>
    %3 = vector.multi_reduction <add>, %2, %cst [1, 2] : vector<1x8x16xf32> to vector<1xf32>
    %4 = vector.shape_cast %3 : vector<1xf32> to vector<1x1x1xf32>
    %5 = vector.extract %4[0, 0, 0] : f32 from vector<1x1x1xf32>
    %6 = arith.mulf %1, %1 : vector<8x16xf32>
    %7 = vector.shape_cast %6 : vector<8x16xf32> to vector<1x8x16xf32>
    %cst_1 = arith.constant dense<0.000000e+00> : vector<1xf32>
    %8 = vector.multi_reduction <add>, %7, %cst_1 [1, 2] : vector<1x8x16xf32> to vector<1xf32>
    %9 = vector.shape_cast %8 : vector<1xf32> to vector<1x1x1xf32>
    %10 = vector.extract %9[0, 0, 0] : f32 from vector<1x1x1xf32>
    %cst_2 = arith.constant 3.125000e-02 : f32
    %11 = arith.mulf %5, %cst_2 : f32
    %cst_3 = arith.constant 3.125000e-02 : f32
    %12 = arith.mulf %10, %cst_3 : f32
    %13 = arith.mulf %11, %11 : f32
    %14 = arith.subf %12, %13 : f32
    %c0_4 = arith.constant 0 : index
    %15 = memref.load %arg1[%c0_4] : memref<4xf32, #tpu.memory_space<smem>>
    %cst_5 = arith.constant 9.99999974E-6 : f32
    %16 = arith.addf %14, %cst_5 : f32
    %17 = math.rsqrt %16 : f32
    %18 = arith.mulf %15, %17 : f32
    %c2 = arith.constant 2 : index
    %19 = memref.load %arg1[%c2] : memref<4xf32, #tpu.memory_space<smem>>
    %20 = arith.mulf %11, %18 : f32
    %21 = arith.subf %19, %20 : f32
    %22 = vector.extract_strided_slice %0 {offsets = [8, 0], sizes = [8, 16], strides = [1, 1]} : vector<16x16xf32> to vector<8x16xf32>
    %23 = vector.shape_cast %22 : vector<8x16xf32> to vector<1x8x16xf32>
    %cst_6 = arith.constant dense<0.000000e+00> : vector<1xf32>
    %24 = vector.multi_reduction <add>, %23, %cst_6 [1, 2] : vector<1x8x16xf32> to vector<1xf32>
    %25 = vector.shape_cast %24 : vector<1xf32> to vector<1x1x1xf32>
    %26 = vector.extract %25[0, 0, 0] : f32 from vector<1x1x1xf32>
    %27 = arith.mulf %22, %22 : vector<8x16xf32>
    %28 = vector.shape_cast %27 : vector<8x16xf32> to vector<1x8x16xf32>
    %cst_7 = arith.constant dense<0.000000e+00> : vector<1xf32>
    %29 = vector.multi_reduction <add>, %28, %cst_7 [1, 2] : vector<1x8x16xf32> to vector<1xf32>
    %30 = vector.shape_cast %29 : vector<1xf32> to vector<1x1x1xf32>
    %31 = vector.extract %30[0, 0, 0] : f32 from vector<1x1x1xf32>
    %cst_8 = arith.constant 3.125000e-02 : f32
    %32 = arith.mulf %26, %cst_8 : f32
    %cst_9 = arith.constant 3.125000e-02 : f32
    %33 = arith.mulf %31, %cst_9 : f32
    %34 = arith.mulf %32, %32 : f32
    %35 = arith.subf %33, %34 : f32
    %c1 = arith.constant 1 : index
    %36 = memref.load %arg1[%c1] : memref<4xf32, #tpu.memory_space<smem>>
    %cst_10 = arith.constant 9.99999974E-6 : f32
    %37 = arith.addf %35, %cst_10 : f32
    %38 = math.rsqrt %37 : f32
    %39 = arith.mulf %36, %38 : f32
    %c3 = arith.constant 3 : index
    %40 = memref.load %arg1[%c3] : memref<4xf32, #tpu.memory_space<smem>>
    %41 = arith.mulf %32, %39 : f32
    %42 = arith.subf %40, %41 : f32
    %43 = tpu.iota {dimensions = array<i32: 0>} : vector<16x1xi32>
    %c8_i32 = arith.constant 8 : i32
    %44 = vector.broadcast %c8_i32 : i32 to vector<16x1xi32>
    %45 = arith.cmpi slt, %43, %44 : vector<16x1xi32>
    %46 = vector.broadcast %18 : f32 to vector<16x1xf32>
    %47 = vector.broadcast %39 : f32 to vector<16x1xf32>
    %48 = arith.select %45, %46, %47 : vector<16x1xi1>, vector<16x1xf32>
    %c8_i32_11 = arith.constant 8 : i32
    %49 = vector.broadcast %c8_i32_11 : i32 to vector<16x1xi32>
    %50 = arith.cmpi slt, %43, %49 : vector<16x1xi32>
    %51 = vector.broadcast %21 : f32 to vector<16x1xf32>
    %52 = vector.broadcast %42 : f32 to vector<16x1xf32>
    %53 = arith.select %50, %51, %52 : vector<16x1xi1>, vector<16x1xf32>
    %54 = vector.broadcast %48 : vector<16x1xf32> to vector<16x16xf32>
    %55 = arith.mulf %0, %54 : vector<16x16xf32>
    %56 = vector.broadcast %53 : vector<16x1xf32> to vector<16x16xf32>
    %57 = arith.addf %55, %56 : vector<16x16xf32>
    %c0_12 = arith.constant 0 : index
    %c0_13 = arith.constant 0 : index
    %58 = vector.load %arg2[%c0_12, %c0_13] : memref<400x512xf32, #tpu.memory_space<vmem>>, vector<16x512xf32>
    %c16 = arith.constant 16 : index
    %c0_14 = arith.constant 0 : index
    %59 = vector.load %arg2[%c16, %c0_14] : memref<400x512xf32, #tpu.memory_space<vmem>>, vector<128x512xf32>
    %c144 = arith.constant 144 : index
    %c0_15 = arith.constant 0 : index
    %60 = vector.load %arg2[%c144, %c0_15] : memref<400x512xf32, #tpu.memory_space<vmem>>, vector<128x512xf32>
    %c272 = arith.constant 272 : index
    %c0_16 = arith.constant 0 : index
    %61 = vector.load %arg2[%c272, %c0_16] : memref<400x512xf32, #tpu.memory_space<vmem>>, vector<128x512xf32>
    %c0_17 = arith.constant 0 : index
    %c0_18 = arith.constant 0 : index
    %62 = vector.load %arg3[%c0_17, %c0_18] : memref<3x512xf32, #tpu.memory_space<vmem>>, vector<1x512xf32>
    %c1_19 = arith.constant 1 : index
    %c0_20 = arith.constant 0 : index
    %63 = vector.load %arg3[%c1_19, %c0_20] : memref<3x512xf32, #tpu.memory_space<vmem>>, vector<1x512xf32>
    %c2_21 = arith.constant 2 : index
    %c0_22 = arith.constant 0 : index
    %64 = vector.load %arg3[%c2_21, %c0_22] : memref<3x512xf32, #tpu.memory_space<vmem>>, vector<1x128xf32>
    %c0_23 = arith.constant 0 : index
    %c0_24 = arith.constant 0 : index
    %65 = vector.load %arg4[%c0_23, %c0_24] : memref<128x128xf32, #tpu.memory_space<vmem>>, vector<128x128xf32>
    %cst_25 = arith.constant dense<0.000000e+00> : vector<16x512xf32>
    %66 = tpu.matmul %57, %58, %cst_25 {dimension_numbers = #tpu.dot_dimension_numbers<[1], [0], [0], [1], [0, 0, 1, 1], [], []>} : vector<16x16xf32>, vector<16x512xf32>, vector<16x512xf32> -> vector<16x512xf32>
    %67 = vector.broadcast %62 : vector<1x512xf32> to vector<16x512xf32>
    %68 = arith.addf %66, %67 : vector<16x512xf32>
    %69 = vector.extract_strided_slice %68 {offsets = [0, 0], sizes = [8, 512], strides = [1, 1]} : vector<16x512xf32> to vector<8x512xf32>
    %70 = vector.extract_strided_slice %69 {offsets = [0, 0], sizes = [8, 128], strides = [1, 1]} : vector<8x512xf32> to vector<8x128xf32>
    %cst_26 = arith.constant 5.000000e-01 : f32
    %71 = vector.broadcast %cst_26 : f32 to vector<8x128xf32>
    %72 = arith.mulf %71, %70 : vector<8x128xf32>
    %73 = math.tanh %72 : vector<8x128xf32>
    %cst_27 = arith.constant 5.000000e-01 : f32
    %74 = vector.broadcast %cst_27 : f32 to vector<8x128xf32>
    %75 = arith.mulf %74, %73 : vector<8x128xf32>
    %cst_28 = arith.constant 5.000000e-01 : f32
    %76 = vector.broadcast %cst_28 : f32 to vector<8x128xf32>
    %77 = arith.addf %75, %76 : vector<8x128xf32>
    %78 = vector.extract_strided_slice %69 {offsets = [0, 256], sizes = [8, 128], strides = [1, 1]} : vector<8x512xf32> to vector<8x128xf32>
    %79 = math.tanh %78 : vector<8x128xf32>
    %80 = vector.extract_strided_slice %69 {offsets = [0, 384], sizes = [8, 128], strides = [1, 1]} : vector<8x512xf32> to vector<8x128xf32>
    %cst_29 = arith.constant 5.000000e-01 : f32
    %81 = vector.broadcast %cst_29 : f32 to vector<8x128xf32>
    %82 = arith.mulf %81, %80 : vector<8x128xf32>
    %83 = math.tanh %82 : vector<8x128xf32>
    %cst_30 = arith.constant 5.000000e-01 : f32
    %84 = vector.broadcast %cst_30 : f32 to vector<8x128xf32>
    %85 = arith.mulf %84, %83 : vector<8x128xf32>
    %cst_31 = arith.constant 5.000000e-01 : f32
    %86 = vector.broadcast %cst_31 : f32 to vector<8x128xf32>
    %87 = arith.addf %85, %86 : vector<8x128xf32>
    %88 = arith.mulf %77, %79 : vector<8x128xf32>
    %89 = math.tanh %88 : vector<8x128xf32>
    %90 = arith.mulf %87, %89 : vector<8x128xf32>
    %91 = vector.extract_strided_slice %68 {offsets = [8, 0], sizes = [8, 512], strides = [1, 1]} : vector<16x512xf32> to vector<8x512xf32>
    %cst_32 = arith.constant dense<0.000000e+00> : vector<8x512xf32>
    %92 = tpu.matmul %90, %59, %cst_32 {dimension_numbers = #tpu.dot_dimension_numbers<[1], [0], [0], [1], [0, 0, 1, 1], [], []>} : vector<8x128xf32>, vector<128x512xf32>, vector<8x512xf32> -> vector<8x512xf32>
    %93 = arith.addf %91, %92 : vector<8x512xf32>
    %94 = vector.extract_strided_slice %93 {offsets = [0, 0], sizes = [8, 128], strides = [1, 1]} : vector<8x512xf32> to vector<8x128xf32>
    %cst_33 = arith.constant 5.000000e-01 : f32
    %95 = vector.broadcast %cst_33 : f32 to vector<8x128xf32>
    %96 = arith.mulf %95, %94 : vector<8x128xf32>
    %97 = math.tanh %96 : vector<8x128xf32>
    %cst_34 = arith.constant 5.000000e-01 : f32
    %98 = vector.broadcast %cst_34 : f32 to vector<8x128xf32>
    %99 = arith.mulf %98, %97 : vector<8x128xf32>
    %cst_35 = arith.constant 5.000000e-01 : f32
    %100 = vector.broadcast %cst_35 : f32 to vector<8x128xf32>
    %101 = arith.addf %99, %100 : vector<8x128xf32>
    %102 = vector.extract_strided_slice %93 {offsets = [0, 256], sizes = [8, 128], strides = [1, 1]} : vector<8x512xf32> to vector<8x128xf32>
    %103 = math.tanh %102 : vector<8x128xf32>
    %104 = vector.extract_strided_slice %93 {offsets = [0, 384], sizes = [8, 128], strides = [1, 1]} : vector<8x512xf32> to vector<8x128xf32>
    %cst_36 = arith.constant 5.000000e-01 : f32
    %105 = vector.broadcast %cst_36 : f32 to vector<8x128xf32>
    %106 = arith.mulf %105, %104 : vector<8x128xf32>
    %107 = math.tanh %106 : vector<8x128xf32>
    %cst_37 = arith.constant 5.000000e-01 : f32
    %108 = vector.broadcast %cst_37 : f32 to vector<8x128xf32>
    %109 = arith.mulf %108, %107 : vector<8x128xf32>
    %cst_38 = arith.constant 5.000000e-01 : f32
    %110 = vector.broadcast %cst_38 : f32 to vector<8x128xf32>
    %111 = arith.addf %109, %110 : vector<8x128xf32>
    %112 = vector.extract_strided_slice %93 {offsets = [0, 128], sizes = [8, 128], strides = [1, 1]} : vector<8x512xf32> to vector<8x128xf32>
    %cst_39 = arith.constant 5.000000e-01 : f32
    %113 = vector.broadcast %cst_39 : f32 to vector<8x128xf32>
    %114 = arith.mulf %113, %112 : vector<8x128xf32>
    %115 = math.tanh %114 : vector<8x128xf32>
    %cst_40 = arith.constant 5.000000e-01 : f32
    %116 = vector.broadcast %cst_40 : f32 to vector<8x128xf32>
    %117 = arith.mulf %116, %115 : vector<8x128xf32>
    %cst_41 = arith.constant 5.000000e-01 : f32
    %118 = vector.broadcast %cst_41 : f32 to vector<8x128xf32>
    %119 = arith.addf %117, %118 : vector<8x128xf32>
    %120 = arith.mulf %119, %88 : vector<8x128xf32>
    %121 = arith.mulf %101, %103 : vector<8x128xf32>
    %122 = arith.addf %120, %121 : vector<8x128xf32>
    %123 = math.tanh %122 : vector<8x128xf32>
    %124 = arith.mulf %111, %123 : vector<8x128xf32>
    %cst_42 = arith.constant dense<0.000000e+00> : vector<8x512xf32>
    %125 = tpu.matmul %90, %60, %cst_42 {dimension_numbers = #tpu.dot_dimension_numbers<[1], [0], [0], [1], [0, 0, 1, 1], [], []>} : vector<8x128xf32>, vector<128x512xf32>, vector<8x512xf32> -> vector<8x512xf32>
    %126 = vector.broadcast %63 : vector<1x512xf32> to vector<8x512xf32>
    %127 = arith.addf %125, %126 : vector<8x512xf32>
    %128 = vector.extract_strided_slice %127 {offsets = [0, 0], sizes = [8, 128], strides = [1, 1]} : vector<8x512xf32> to vector<8x128xf32>
    %cst_43 = arith.constant 5.000000e-01 : f32
    %129 = vector.broadcast %cst_43 : f32 to vector<8x128xf32>
    %130 = arith.mulf %129, %128 : vector<8x128xf32>
    %131 = math.tanh %130 : vector<8x128xf32>
    %cst_44 = arith.constant 5.000000e-01 : f32
    %132 = vector.broadcast %cst_44 : f32 to vector<8x128xf32>
    %133 = arith.mulf %132, %131 : vector<8x128xf32>
    %cst_45 = arith.constant 5.000000e-01 : f32
    %134 = vector.broadcast %cst_45 : f32 to vector<8x128xf32>
    %135 = arith.addf %133, %134 : vector<8x128xf32>
    %136 = vector.extract_strided_slice %127 {offsets = [0, 256], sizes = [8, 128], strides = [1, 1]} : vector<8x512xf32> to vector<8x128xf32>
    %137 = math.tanh %136 : vector<8x128xf32>
    %138 = vector.extract_strided_slice %127 {offsets = [0, 384], sizes = [8, 128], strides = [1, 1]} : vector<8x512xf32> to vector<8x128xf32>
    %cst_46 = arith.constant 5.000000e-01 : f32
    %139 = vector.broadcast %cst_46 : f32 to vector<8x128xf32>
    %140 = arith.mulf %139, %138 : vector<8x128xf32>
    %141 = math.tanh %140 : vector<8x128xf32>
    %cst_47 = arith.constant 5.000000e-01 : f32
    %142 = vector.broadcast %cst_47 : f32 to vector<8x128xf32>
    %143 = arith.mulf %142, %141 : vector<8x128xf32>
    %cst_48 = arith.constant 5.000000e-01 : f32
    %144 = vector.broadcast %cst_48 : f32 to vector<8x128xf32>
    %145 = arith.addf %143, %144 : vector<8x128xf32>
    %146 = arith.mulf %135, %137 : vector<8x128xf32>
    %147 = math.tanh %146 : vector<8x128xf32>
    %148 = arith.mulf %145, %147 : vector<8x128xf32>
    %cst_49 = arith.constant dense<0.000000e+00> : vector<8x128xf32>
    %149 = tpu.matmul %148, %65, %cst_49 {dimension_numbers = #tpu.dot_dimension_numbers<[1], [0], [0], [1], [0, 0, 1, 1], [], []>} : vector<8x128xf32>, vector<128x128xf32>, vector<8x128xf32> -> vector<8x128xf32>
    %150 = vector.broadcast %64 : vector<1x128xf32> to vector<8x128xf32>
    %151 = arith.addf %149, %150 : vector<8x128xf32>
    %c0_50 = arith.constant 0 : index
    %c0_51 = arith.constant 0 : index
    %152 = vector.load %arg5[%c0_50, %c0_51] : memref<16x128xf32, #tpu.memory_space<vmem>>, vector<8x128xf32>
    tpu.vector_store %arg5[%c0_50, %c0_51], %151 {strides = array<i32>} : memref<16x128xf32, #tpu.memory_space<vmem>>, vector<8x128xf32>,
    %cst_52 = arith.constant dense<0.000000e+00> : vector<8x512xf32>
    %153 = tpu.matmul %124, %60, %cst_52 {dimension_numbers = #tpu.dot_dimension_numbers<[1], [0], [0], [1], [0, 0, 1, 1], [], []>} : vector<8x128xf32>, vector<128x512xf32>, vector<8x512xf32> -> vector<8x512xf32>
    %154 = vector.broadcast %63 : vector<1x512xf32> to vector<8x512xf32>
    %155 = arith.addf %153, %154 : vector<8x512xf32>
    %cst_53 = arith.constant dense<0.000000e+00> : vector<8x512xf32>
    %156 = tpu.matmul %148, %61, %cst_53 {dimension_numbers = #tpu.dot_dimension_numbers<[1], [0], [0], [1], [0, 0, 1, 1], [], []>} : vector<8x128xf32>, vector<128x512xf32>, vector<8x512xf32> -> vector<8x512xf32>
    %157 = arith.addf %155, %156 : vector<8x512xf32>
    %158 = vector.extract_strided_slice %157 {offsets = [0, 0], sizes = [8, 128], strides = [1, 1]} : vector<8x512xf32> to vector<8x128xf32>
    %cst_54 = arith.constant 5.000000e-01 : f32
    %159 = vector.broadcast %cst_54 : f32 to vector<8x128xf32>
    %160 = arith.mulf %159, %158 : vector<8x128xf32>
    %161 = math.tanh %160 : vector<8x128xf32>
    %cst_55 = arith.constant 5.000000e-01 : f32
    %162 = vector.broadcast %cst_55 : f32 to vector<8x128xf32>
    %163 = arith.mulf %162, %161 : vector<8x128xf32>
    %cst_56 = arith.constant 5.000000e-01 : f32
    %164 = vector.broadcast %cst_56 : f32 to vector<8x128xf32>
    %165 = arith.addf %163, %164 : vector<8x128xf32>
    %166 = vector.extract_strided_slice %157 {offsets = [0, 256], sizes = [8, 128], strides = [1, 1]} : vector<8x512xf32> to vector<8x128xf32>
    %167 = math.tanh %166 : vector<8x128xf32>
    %168 = vector.extract_strided_slice %157 {offsets = [0, 384], sizes = [8, 128], strides = [1, 1]} : vector<8x512xf32> to vector<8x128xf32>
    %cst_57 = arith.constant 5.000000e-01 : f32
    %169 = vector.broadcast %cst_57 : f32 to vector<8x128xf32>
    %170 = arith.mulf %169, %168 : vector<8x128xf32>
    %171 = math.tanh %170 : vector<8x128xf32>
    %cst_58 = arith.constant 5.000000e-01 : f32
    %172 = vector.broadcast %cst_58 : f32 to vector<8x128xf32>
    %173 = arith.mulf %172, %171 : vector<8x128xf32>
    %cst_59 = arith.constant 5.000000e-01 : f32
    %174 = vector.broadcast %cst_59 : f32 to vector<8x128xf32>
    %175 = arith.addf %173, %174 : vector<8x128xf32>
    %176 = vector.extract_strided_slice %157 {offsets = [0, 128], sizes = [8, 128], strides = [1, 1]} : vector<8x512xf32> to vector<8x128xf32>
    %cst_60 = arith.constant 5.000000e-01 : f32
    %177 = vector.broadcast %cst_60 : f32 to vector<8x128xf32>
    %178 = arith.mulf %177, %176 : vector<8x128xf32>
    %179 = math.tanh %178 : vector<8x128xf32>
    %cst_61 = arith.constant 5.000000e-01 : f32
    %180 = vector.broadcast %cst_61 : f32 to vector<8x128xf32>
    %181 = arith.mulf %180, %179 : vector<8x128xf32>
    %cst_62 = arith.constant 5.000000e-01 : f32
    %182 = vector.broadcast %cst_62 : f32 to vector<8x128xf32>
    %183 = arith.addf %181, %182 : vector<8x128xf32>
    %184 = arith.mulf %183, %146 : vector<8x128xf32>
    %185 = arith.mulf %165, %167 : vector<8x128xf32>
    %186 = arith.addf %184, %185 : vector<8x128xf32>
    %187 = math.tanh %186 : vector<8x128xf32>
    %188 = arith.mulf %175, %187 : vector<8x128xf32>
    %cst_63 = arith.constant dense<0.000000e+00> : vector<8x128xf32>
    %189 = tpu.matmul %188, %65, %cst_63 {dimension_numbers = #tpu.dot_dimension_numbers<[1], [0], [0], [1], [0, 0, 1, 1], [], []>} : vector<8x128xf32>, vector<128x128xf32>, vector<8x128xf32> -> vector<8x128xf32>
    %190 = vector.broadcast %64 : vector<1x128xf32> to vector<8x128xf32>
    %191 = arith.addf %189, %190 : vector<8x128xf32>
    %c8 = arith.constant 8 : index
    %c0_64 = arith.constant 0 : index
    %192 = vector.load %arg5[%c8, %c0_64] : memref<16x128xf32, #tpu.memory_space<vmem>>, vector<8x128xf32>
    tpu.vector_store %arg5[%c8, %c0_64], %191 {strides = array<i32>} : memref<16x128xf32, #tpu.memory_space<vmem>>, vector<8x128xf32>,
    return
  }
}

</mosaic_0001>

<bundles_post_ra>
// kernel: tpu_custom_call.1
= control target key start
LH: loop header
LB: loop body
LE: loop exit
PB: predicated region body
PF: predicated region fallthrough
CT: control target
= control target key end

     0   :  { %10 = vsyncpa [#allocation3], 0  ;;  %s2419_s0 = inlined_call_operand.hbm [shape: f32[16,16], index: 0, kind: input, shape index: {}]   ;;  %s2420_s1 = inlined_call_operand.vmem [shape: f32[4], index: 1, kind: input, shape index: {}]   ;;  %s2421_s2 = inlined_call_operand.hbm [shape: f32[400,512], index: 2, kind: input, shape index: {}]   ;;  %s2422_s3 = inlined_call_operand.hbm [shape: f32[3,512], index: 3, kind: input, shape index: {}]   ;;  %s2423_s4 = inlined_call_operand.hbm [shape: f32[128,128], index: 4, kind: input, shape index: {}]   ;;  %s2424_s5 = inlined_call_operand.hbm [shape: f32[16,128], index: 5, kind: output, shape index: {}]  }
   0x1   :  { %11 = vsyncpa [#allocation5], 0 }
   0x2   :  { %12 = vsyncpa [#allocation8], 0 }
   0x3   :  { %13 = vsyncpa [#allocation11], 0 }
   0x4   :  { %14 = vsyncpa [#allocation4], 0  ;;  %s2034_s18 = smov [#allocation7]   ;;  %s1902_s22 = scalar_lea.hbm %s2421_s2, 25600 }
   0x5   :  { %s42_s19 = sshll.u32 %s2034_s18, 4  ;;  %p1903_p0 = scmp.ne.s32.totalorder %s2421_s2, %s1902_s22  ;;  %s43_s19 = int_to_ptr.vmem [resolvable:$true] %s42_s19 }
   0x6   :  { %p1906_p1 = scmp.lt.u32.totalorder %s1902_s22, %s2421_s2 }
   0x8   :  { %p1908_p2 = pnand %p1906_p1, %p1903_p0 }
   0xa   :  { %1911 = shalt.err (!%p1908_p2)
}
   0xb   :  { %s1912_s27 = scalar_lea.vmem %s43_s19, 25600  ;;  %p1917_p4 = scmp.lt.s32.totalorder %s43_s19, %s43_s19 }
   0xc   :  { %p1913_p3 = scmp.ne.s32.totalorder %s43_s19, %s1912_s27  ;;  %p1918_p5 = scmp.lt.s32.totalorder %s1912_s27, %s1912_s27 }
   0xe   :  { %p1919_p6 = por %p1918_p5, %p1917_p4 }
  0x10   :  { %p1920_p7 = pnand %p1919_p6, %p1913_p3 }
  0x12   :  { %1923 = shalt.err (!%p1920_p7)
}
  0x13   :  { %s2035_s28 = smov 512   ;;  %s2036_s29 = smov 32  }
  0x14   :  { %48 = dma.hbm_to_vmem [thread:$0]  %s2421_s2, 25600, %s43_s19, [#allocation8], %s2035_s28, %s2035_s28, %s2036_s29  }
  0x15   :  { %s2037_s7 = smov [#allocation2]   ;;  %s1924_s11 = scalar_lea.hbm %s2419_s0, 256 }
  0x16   :  { %s20_s8 = sshll.u32 %s2037_s7, 4  ;;  %p1925_p8 = scmp.ne.s32.totalorder %s2419_s0, %s1924_s11  ;;  %s21_s8 = int_to_ptr.vmem [resolvable:$true] %s20_s8 }
  0x17   :  { %p1928_p9 = scmp.lt.u32.totalorder %s1924_s11, %s2419_s0 }
  0x19   :  { %p1930_p10 = pnand %p1928_p9, %p1925_p8 }
  0x1b   :  { %1933 = shalt.err (!%p1930_p10)
}
  0x1c   :  { %s1934_s16 = scalar_lea.vmem %s21_s8, 256  ;;  %p1939_p12 = scmp.lt.s32.totalorder %s21_s8, %s21_s8 }
  0x1d   :  { %p1935_p11 = scmp.ne.s32.totalorder %s21_s8, %s1934_s16  ;;  %p1940_p13 = scmp.lt.s32.totalorder %s1934_s16, %s1934_s16 }
  0x1f   :  { %p1941_p0 = por %p1940_p13, %p1939_p12 }
  0x21   :  { %p1942_p1 = pnand %p1941_p0, %p1935_p11 }
  0x23   :  { %1945 = shalt.err (!%p1942_p1)
}
  0x24   :  { %s2038_s2 = smov 128   ;;  %s2039_s17 = smov 8  }
  0x25   :  { %26 = dma.hbm_to_vmem [thread:$0]  %s2419_s0, 256, %s21_s8, [#allocation3], %s2038_s2, %s2038_s2, %s2039_s17  }
  0x26   :  { %s33_s22 = sshll.u32 %s2420_s1, 4  ;;  %s34_s22 = int_to_ptr.vmem [resolvable:$true] %s33_s22 }
  0x27   :  { %s1946_s23 = scalar_lea.vmem %s34_s22, 16  ;;  %p1951_p3 = scmp.lt.s32.totalorder %s34_s22, %s34_s22 }
  0x28   :  { %p1947_p2 = scmp.ne.s32.totalorder %s34_s22, %s1946_s23  ;;  %p1952_p4 = scmp.lt.s32.totalorder %s1946_s23, %s1946_s23 }
  0x2a   :  { %p1953_p5 = por %p1952_p4, %p1951_p3 }
  0x2c   :  { %p1954_p6 = pnand %p1953_p5, %p1947_p2 }
  0x2e   :  { %1957 = shalt.err (!%p1954_p6)
}
  0x2f   :  { %s2040_s24 = smov [#allocation6]   ;;  %s2041_s25 = smov [#allocation9]  }
  0x30   :  { %36 = dma.vmem_to_smem %s34_s22, 16, %s2040_s24, [#allocation5]  }
  0x31   :  { %s55_s26 = sshll.u32 %s2041_s25, 4  ;;  %s2042_s27 = smov [#allocation10]   ;;  %s56_s26 = int_to_ptr.vmem [resolvable:$true] %s55_s26 }
  0x32   :  { %s64_s28 = sshll.u32 %s2042_s27, 4  ;;  %s1958_s30 = scalar_lea.hbm %s2422_s3, 256  ;;  %s65_s28 = int_to_ptr.vmem [resolvable:$true] %s64_s28 }
  0x33   :  { %p1959_p7 = scmp.ne.s32.totalorder %s2422_s3, %s1958_s30  ;;  %p1962_p8 = scmp.lt.u32.totalorder %s1958_s30, %s2422_s3 }
  0x35   :  { %p1964_p9 = pnand %p1962_p8, %p1959_p7 }
  0x37   :  { %1967 = shalt.err (!%p1964_p9)
}
  0x38   :  { %s1968_s9 = scalar_lea.vmem %s56_s26, 256  ;;  %p1973_p11 = scmp.lt.s32.totalorder %s56_s26, %s56_s26 }
  0x39   :  { %p1969_p10 = scmp.ne.s32.totalorder %s56_s26, %s1968_s9  ;;  %p1974_p12 = scmp.lt.s32.totalorder %s1968_s9, %s1968_s9 }
  0x3b   :  { %p1975_p13 = por %p1974_p12, %p1973_p11 }
  0x3d   :  { %p1976_p0 = pnand %p1975_p13, %p1969_p10 }
  0x3f   :  { %1979 = shalt.err (!%p1976_p0)
}
  0x40   :  { %58 = dma.hbm_to_vmem [thread:$0]  %s2422_s3, 256, %s56_s26, [#allocation8]  }
  0x41   :  { %s1980_s14 = scalar_lea.hbm %s2423_s4, 2048 }
  0x42   :  { %p1981_p1 = scmp.ne.s32.totalorder %s2423_s4, %s1980_s14  ;;  %p1984_p2 = scmp.lt.u32.totalorder %s1980_s14, %s2423_s4 }
  0x44   :  { %p1986_p3 = pnand %p1984_p2, %p1981_p1 }
  0x46   :  { %1989 = shalt.err (!%p1986_p3)
}
  0x47   :  { %s1990_s20 = scalar_lea.vmem %s65_s28, 2048  ;;  %p1995_p5 = scmp.lt.s32.totalorder %s65_s28, %s65_s28 }
  0x48   :  { %p1991_p4 = scmp.ne.s32.totalorder %s65_s28, %s1990_s20  ;;  %p1996_p6 = scmp.lt.s32.totalorder %s1990_s20, %s1990_s20 }
  0x4a   :  { %p1997_p7 = por %p1996_p6, %p1995_p5 }
  0x4c   :  { %p1998_p8 = pnand %p1997_p7, %p1991_p4 }
  0x4e   :  { %2001 = shalt.err (!%p1998_p8)
}
  0x4f   :  { %70 = dma.hbm_to_vmem [thread:$0]  %s2423_s4, 2048, %s65_s28, [#allocation11], %s2038_s2, %s2038_s2, %s2039_s17  }
  0x50   :  { %2024 = dma.done.wait [#allocation3], 256  }
  0x51   :  { %2025 = vsyncadd [#allocation3], 4294967040 }
  0x52   :  { %2026 = dma.done.wait [#allocation5], 16  }
  0x53   :  { %2027 = vsyncadd [#allocation5], 4294967280 }
  0x54   :  { %2028 = dma.done.wait [#allocation8], 25856  }
  0x55   :  { %2029 = vsyncadd [#allocation8], 4294941440 }
  0x56   :  { %2030 = dma.done.wait [#allocation11], 2048  }
  0x57   :  { %2031 = vsyncadd [#allocation11], 4294965248 }
  0x58   :  { %86 = sfence }
  0x59   :  { %v2134_v0 = vld [vmem:[#allocation2] sm:$0xff]  ;;  %vm89_vm0 = vcmask 130048   ;;  %v2141_v4 = vld [vmem:[#allocation2 + $0x8] sm:$0xff]  ;;  %v176_v18 = vld [vmem:[#allocation7 + $0x8] sm:$0xff]  ;;  %v2043_v34 = vmov 0.0   ;;  %s115_s28 = sld [smem:[#allocation6]] }
  0x5a   :  { %v90_v1 = vsel %vm89_vm0, %v2134_v0, 0.0  ;;  %v100_v2 = vmul.f32 %v2134_v0, %v2134_v0  ;;  %v124_v5 = vsel %vm89_vm0, %v2141_v4, 0.0  ;;  %v134_v6 = vmul.f32 %v2141_v4, %v2141_v4  ;;  %v180_v19 = vld [vmem:[#allocation7 + $0x28] sm:$0xff]  ;;  %v178_v20 = vld [vmem:[#allocation7 + $0x18] sm:$0xff]  ;;  %v175_v23 = vld [vmem:[#allocation7] sm:$0xff]  ;;  %486 = vmatprep.mubr.f32.mxu0 %v2043_v34  ;;  %562 = vmatprep.mubr.f32.mxu1 %v2043_v34  ;;  %s1397_s0 = sld [smem:[#allocation6 + $0x2]] }
  0x5b   :  { %91 = vadd.xlane.f32.xlu0 %v90_v1  ;;  %125 = vadd.xlane.f32.xlu1 %v124_v5  ;;  %v1509_v21 = vpack.c.bf16 %v180_v19, %v176_v18  ;;  %v182_v22 = vld [vmem:[#allocation7 + $0x38] sm:$0xff]  ;;  %v179_v24 = vld [vmem:[#allocation7 + $0x20] sm:$0xff]  ;;  %v177_v29 = vld [vmem:[#allocation7 + $0x10] sm:$0xff]  ;;  %s1398_s14 = sld [smem:[#allocation6 + $0x1]]  ;;  %s1399_s15 = sld [smem:[#allocation6 + $0x3]]  ;;  %vm2045_vm1 = vmmov 0  }
  0x5c   :  { %v101_v3 = vsel %vm89_vm0, %v100_v2, 0.0  ;;  %v135_v7 = vsel %vm89_vm0, %v134_v6, 0.0  ;;  %v1513_v27 = vpack.c.bf16 %v182_v22, %v178_v20  ;;  %v1511_v28 = vpack.c.bf16 %v179_v24, %v175_v23  ;;  %v181_v30 = vld [vmem:[#allocation7 + $0x30] sm:$0xff]  ;;  %v184_v61 = vld [vmem:[#allocation7 + $0x48] sm:$0xff]  ;;  %v186_v63 = vld [vmem:[#allocation7 + $0x58] sm:$0xff]  ;;  %s2046_s3 = smov [#allocation12]  }
  0x5d   :  { %1510 = vmatprep.subr.bf16.mxu0 %v1509_v21  ;;  %v1515_v31 = vpack.c.bf16 %v181_v30, %v177_v29  ;;  %v188_v62 = vld [vmem:[#allocation7 + $0x68] sm:$0xff]  ;;  %v190_v1 = vld [vmem:[#allocation7 + $0x78] sm:$0xff]  ;;  %v183_v2 = vld [vmem:[#allocation7 + $0x40] sm:$0xff]  ;;  %s1382_s21 = sshll.u32 %s2046_s3, 4  ;;  %s1383_s21 = int_to_ptr.vmem [resolvable:$true] %s1382_s21 }
  0x5e   :  { %1514 = vmatprep.subr.bf16.mxu1 %v1513_v27  ;;  %1512 = vmatpush1.bf16.msra.mxu0 %v1511_v28  ;;  %v1549_v5 = vpack.c.bf16 %v190_v1, %v186_v63  ;;  %v185_v6 = vld [vmem:[#allocation7 + $0x50] sm:$0xff]  ;;  %v200_v21 = vld [vmem:[#allocation7 + $0xc8] sm:$0xff]  ;;  %v202_v23 = vld [vmem:[#allocation7 + $0xd8] sm:$0xff]  ;;  %p2007_p10 = scmp.lt.s32.totalorder %s1383_s21, %s1383_s21 }
  0x5f   :  { %102 = vadd.xlane.f32.xlu0 %v101_v3  ;;  %136 = vadd.xlane.f32.xlu1 %v135_v7  ;;  %v187_v3 = vld [vmem:[#allocation7 + $0x60] sm:$0xff]  ;;  %v189_v7 = vld [vmem:[#allocation7 + $0x70] sm:$0xff]  ;;  %v204_v22 = vld [vmem:[#allocation7 + $0xe8] sm:$0xff] }
  0x60   :  { %1516 = vmatpush1.bf16.msra.mxu1 %v1515_v31  ;;  %v193_v18 = vld [vmem:[#allocation7 + $0x90] sm:$0xff]  ;;  %v1525_v24 = vpack.c.bf16 %v204_v22, %v200_v21  ;;  %v203_v27 = vld [vmem:[#allocation7 + $0xe0] sm:$0xff]  ;;  %v246_v22 = vld [vmem:[#allocation7 + $0x238] sm:$0xff] }
  0x61   :  { %1550 = vmatprep.subr.bf16.mxu1 %v1549_v5  ;;  %v197_v19 = vld [vmem:[#allocation7 + $0xb0] sm:$0xff]  ;;  %v223_v63 = vld [vmem:[#allocation7 + $0x180] sm:$0xff] }
  0x62   :  { %v1555_v20 = vpack.c.bf16 %v197_v19, %v193_v18  ;;  %v201_v30 = vld [vmem:[#allocation7 + $0xd0] sm:$0xff]  ;;  %v240_v18 = vld [vmem:[#allocation7 + $0x208] sm:$0xff] }
  0x63   :  { %v205_v31 = vld [vmem:[#allocation7 + $0xf0] sm:$0xff]  ;;  %v244_v19 = vld [vmem:[#allocation7 + $0x228] sm:$0xff] }
  0x64   :  { %v229_v5 = vld [vmem:[#allocation7 + $0x1b0] sm:$0xff]  ;;  %v1545_v21 = vpack.c.bf16 %v244_v19, %v240_v18  ;;  %v268_v18 = vld [vmem:[#allocation7 + $0x2e8] sm:$0xff]  ;;  %v266_v19 = vld [vmem:[#allocation7 + $0x2d8] sm:$0xff] }
  0xe8   :  { %v92_v8 = vpop.xlane.xlu0 %91  ;;  %v126_v35 = vpop.xlane.xlu1 %125 }
  0xe9   :  { %v93_v9 = vrot.slane %v92_v8, 4  ;;  %v127_v37 = vrot.slane %v126_v35, 4 }
  0xeb   :  { %v94_v10 = vadd.f32 %v93_v9, %v92_v8  ;;  %v128_v39 = vadd.f32 %v127_v37, %v126_v35  ;;  %v1551_v8 = vpack.c.bf16 %v189_v7, %v185_v6  ;;  %v192_v9 = vld [vmem:[#allocation7 + $0x88] sm:$0xff] }
  0xec   :  { %v103_v11 = vpop.xlane.xlu0 %102  ;;  %v137_v36 = vpop.xlane.xlu1 %136  ;;  %v212_v35 = vld [vmem:[#allocation7 + $0x128] sm:$0xff] }
  0xed   :  { %v95_v12 = vrot.slane %v94_v10, 2  ;;  %v104_v13 = vrot.slane %v103_v11, 4  ;;  %v138_v38 = vrot.slane %v137_v36, 4  ;;  %v129_v41 = vrot.slane %v128_v39, 2  ;;  %v232_v6 = vld [vmem:[#allocation7 + $0x1c8] sm:$0xff] }
  0xee   :  { %v236_v7 = vld [vmem:[#allocation7 + $0x1e8] sm:$0xff] }
  0xef   :  { %v105_v14 = vadd.f32 %v104_v13, %v103_v11  ;;  %v96_v15 = vadd.f32 %v95_v12, %v94_v10  ;;  %v139_v40 = vadd.f32 %v138_v38, %v137_v36  ;;  %v130_v44 = vadd.f32 %v129_v41, %v128_v39  ;;  %v196_v10 = vld [vmem:[#allocation7 + $0xa8] sm:$0xff]  ;;  %v194_v11 = vld [vmem:[#allocation7 + $0x98] sm:$0xff]  ;;  %v207_v39 = vld [vmem:[#allocation7 + $0x100] sm:$0xff] }
  0xf0   :  { %v1521_v12 = vpack.c.bf16 %v196_v10, %v192_v9  ;;  %v198_v13 = vld [vmem:[#allocation7 + $0xb8] sm:$0xff]  ;;  %v1541_v9 = vpack.c.bf16 %v236_v7, %v232_v6 }
  0xf1   :  { %v106_v16 = vrot.slane %v105_v14, 2  ;;  %v97_v17 = vrot.slane %v96_v15, 1  ;;  %v140_v42 = vrot.slane %v139_v40, 2  ;;  %v131_v46 = vrot.slane %v130_v44, 1  ;;  %v210_v36 = vld [vmem:[#allocation7 + $0x118] sm:$0xff] }
  0xf2   :  { %v214_v38 = vld [vmem:[#allocation7 + $0x138] sm:$0xff] }
  0xf3   :  { %v107_v25 = vadd.f32 %v106_v16, %v105_v14  ;;  %v98_v26 = vadd.f32 %v97_v17, %v96_v15  ;;  %v141_v45 = vadd.f32 %v140_v42, %v139_v40  ;;  %v132_v48 = vadd.f32 %v131_v46, %v130_v44  ;;  %v191_v14 = vld [vmem:[#allocation7 + $0x80] sm:$0xff]  ;;  %v213_v44 = vld [vmem:[#allocation7 + $0x130] sm:$0xff]  ;;  %v216_v46 = vld [vmem:[#allocation7 + $0x148] sm:$0xff] }
  0xf4   :  { %v195_v15 = vld [vmem:[#allocation7 + $0xa0] sm:$0xff]  ;;  %v1553_v16 = vpack.c.bf16 %v198_v13, %v194_v11  ;;  %v1561_v41 = vpack.c.bf16 %v214_v38, %v210_v36  ;;  %v238_v10 = vld [vmem:[#allocation7 + $0x1f8] sm:$0xff] }
  0xf5   :  { %1837 = vpush %v98_v26  ;;  %v108_v32 = vrot.slane %v107_v25, 1  ;;  %v142_v47 = vrot.slane %v141_v45, 1  ;;  %v1523_v17 = vpack.c.bf16 %v195_v15, %v191_v14  ;;  %v199_v26 = vld [vmem:[#allocation7 + $0xc0] sm:$0xff]  ;;  %v233_v15 = vld [vmem:[#allocation7 + $0x1d0] sm:$0xff] }
  0xf6   :  { %v1527_v29 = vpack.c.bf16 %v203_v27, %v199_v26  ;;  %v211_v40 = vld [vmem:[#allocation7 + $0x120] sm:$0xff]  ;;  %v241_v27 = vld [vmem:[#allocation7 + $0x210] sm:$0xff] }
  0xf7   :  { %v109_v33 = vadd.f32 %v108_v32, %v107_v25  ;;  %v143_v49 = vadd.f32 %v142_v47, %v141_v45  ;;  %v206_v25 = vld [vmem:[#allocation7 + $0xf8] sm:$0xff]  ;;  %v1559_v32 = vpack.c.bf16 %v205_v31, %v201_v30  ;;  %v1531_v42 = vpack.c.bf16 %v211_v40, %v207_v39  ;;  %v220_v47 = vld [vmem:[#allocation7 + $0x168] sm:$0xff]  ;;  %v231_v11 = vld [vmem:[#allocation7 + $0x1c0] sm:$0xff] }
  0xf8   :  { %v1557_v28 = vpack.c.bf16 %v206_v25, %v202_v23  ;;  %v239_v23 = vld [vmem:[#allocation7 + $0x200] sm:$0xff]  ;;  %v248_v30 = vld [vmem:[#allocation7 + $0x248] sm:$0xff] }
  0xf9   :  { %1839 = vpush %v109_v33  ;;  %v208_v33 = vld [vmem:[#allocation7 + $0x108] sm:$0xff] }
  0xfa   :  { %v1529_v37 = vpack.c.bf16 %v212_v35, %v208_v33  ;;  %v252_v31 = vld [vmem:[#allocation7 + $0x268] sm:$0xff]  ;;  %v254_v35 = vld [vmem:[#allocation7 + $0x278] sm:$0xff] }
  0xfb   :  { %v2165_v33 = vpack.c.bf16 %v252_v31, %v248_v30  ;;  %v2174_v40 = vld [vmem:[#allocation9] ss:$4 sm:$0xf]  ;;  %v274_v31 = vld [vmem:[#allocation7 + $0x318] sm:$0xff] }
  0xfc   :  { %v276_v30 = vld [vmem:[#allocation7 + $0x328] sm:$0xff] }
 0x126   :  { %s1838_s4 = spop %1837 }
 0x127   :  { %s2150_s22 = smul.f32 0.03125, %s1838_s4  ;;  %s2002_s4 = scalar_lea.vmem %s1383_s21, 256 }
 0x128   :  { %p2003_p9 = scmp.ne.s32.totalorder %s1383_s21, %s2002_s4  ;;  %p2008_p11 = scmp.lt.s32.totalorder %s2002_s4, %s2002_s4 }
 0x129   :  { %s113_s23 = smul.f32 %s2150_s22, %s2150_s22 }
 0x12a   :  { %s1840_s24 = spop %1839  ;;  %p2009_p12 = por %p2008_p11, %p2007_p10 }
 0x12b   :  { %s112_s25 = smul.f32 0.03125, %s1840_s24 }
 0x12c   :  { %p2010_p13 = pnand %p2009_p12, %p2003_p9 }
 0x12d   :  { %s114_s26 = ssub.f32 %s112_s25, %s113_s23 }
 0x12f   :  { %s116_s27 = sadd.f32 1e-05, %s114_s26 }
 0x131   :  { %v117_v43 = vstv %s116_s27 }
 0x132   :  { %1862 = vrsqrt.f32 %v117_v43  ;;  %v209_v43 = vld [vmem:[#allocation7 + $0x110] sm:$0xff] }
 0x133   :  { %v1563_v45 = vpack.c.bf16 %v213_v44, %v209_v43 }
 0x13c   :  { %v1863_v50 = vpop.eup %1862 }
 0x13d   :  { %1841 = vpush %v1863_v50  ;;  %v222_v50 = vld [vmem:[#allocation7 + $0x178] sm:$0xff] }
 0x13e   :  { %1843 = vpush %v132_v48  ;;  %v218_v48 = vld [vmem:[#allocation7 + $0x158] sm:$0xff] }
 0x13f   :  { %1845 = vpush %v143_v49  ;;  %v1533_v49 = vpack.c.bf16 %v220_v47, %v216_v46 }
 0x16e   :  { %s1842_s29 = spop %1841 }
 0x16f   :  { %s120_s30 = smul.f32 %s1842_s29, %s115_s28  ;;  %s1844_s1 = spop %1843 }
 0x170   :  { %s145_s6 = smul.f32 0.03125, %s1844_s1  ;;  %s1846_s7 = spop %1845 }
 0x171   :  { %s122_s8 = smul.f32 %s120_s30, %s2150_s22  ;;  %v163_v51 = vstv %s120_s30 }
 0x172   :  { %s147_s9 = smul.f32 %s145_s6, %s145_s6  ;;  %v171_v52 = vmul.f32 %v163_v51, %v2134_v0  ;;  %v1517_v0 = vpack.c.bf16 %v188_v62, %v184_v61  ;;  %v215_v51 = vld [vmem:[#allocation7 + $0x140] sm:$0xff]  ;;  %v230_v62 = vld [vmem:[#allocation7 + $0x1b8] sm:$0xff] }
 0x173   :  { %s123_s10 = ssub.f32 %s1397_s0, %s122_s8  ;;  %s146_s11 = smul.f32 0.03125, %s1846_s7 }
 0x174   :  { %1518 = vmatprep.subr.bf16.mxu0 %v1517_v0  ;;  %v227_v0 = vld [vmem:[#allocation7 + $0x1a0] sm:$0xff] }
 0x175   :  { %v167_v53 = vstv %s123_s10  ;;  %s148_s12 = ssub.f32 %s146_s11, %s147_s9 }
 0x176   :  { %v173_v54 = vadd.f32 %v171_v52, %v167_v53  ;;  %v219_v52 = vld [vmem:[#allocation7 + $0x160] sm:$0xff]  ;;  %v1565_v53 = vpack.c.bf16 %v222_v50, %v218_v48 }
 0x177   :  { %s150_s13 = sadd.f32 1e-05, %s148_s12 }
 0x178   :  { %1400 = vmatmul.mubr.msk.f32.vlgmr.msra.gmra.mrb[0].mxu0 %vm89_vm0, %v173_v54  ;;  %1402 = vmatmul.mubr.msk.f32.vlgmr.msra.gmra.mrb[0].mxu1 %vm89_vm0, %v173_v54  ;;  %v1535_v54 = vpack.c.bf16 %v219_v52, %v215_v51 }
 0x179   :  { %v151_v55 = vstv %s150_s13  ;;  %491 = vmatprep.mubr.f32.mxu0 %v2043_v34  ;;  %568 = vmatprep.mubr.f32.mxu1 %v2043_v34 }
 0x17a   :  { %1864 = vrsqrt.f32 %v151_v55  ;;  %1552 = vmatpush1.bf16.msra.mxu1 %v1551_v8  ;;  %v217_v55 = vld [vmem:[#allocation7 + $0x150] sm:$0xff]  ;;  %v234_v8 = vld [vmem:[#allocation7 + $0x1d8] sm:$0xff] }
 0x17b   :  { %1554 = vmatprep.subr.bf16.mxu1 %v1553_v16  ;;  %v1573_v13 = vpack.c.bf16 %v238_v10, %v234_v8  ;;  %v237_v16 = vld [vmem:[#allocation7 + $0x1f0] sm:$0xff]  ;;  %v255_v10 = vld [vmem:[#allocation7 + $0x280] sm:$0xff] }
 0x17e   :  { %1556 = vmatpush1.bf16.msra.mxu1 %v1555_v20  ;;  %v242_v20 = vld [vmem:[#allocation7 + $0x218] sm:$0xff] }
 0x17f   :  { %1558 = vmatprep.subr.bf16.mxu1 %v1557_v28  ;;  %v1577_v25 = vpack.c.bf16 %v246_v22, %v242_v20  ;;  %v245_v28 = vld [vmem:[#allocation7 + $0x230] sm:$0xff]  ;;  %v270_v20 = vld [vmem:[#allocation7 + $0x2f8] sm:$0xff] }
 0x182   :  { %1560 = vmatpush1.bf16.msra.mxu1 %v1559_v32  ;;  %v250_v32 = vld [vmem:[#allocation7 + $0x258] sm:$0xff] }
 0x183   :  { %1562 = vmatprep.subr.bf16.mxu1 %v1561_v41  ;;  %v2167_v36 = vpack.c.bf16 %v254_v35, %v250_v32  ;;  %v278_v32 = vld [vmem:[#allocation7 + $0x338] sm:$0xff] }
 0x184   :  { %v1865_v56 = vpop.eup %1864 }
 0x185   :  { %1847 = vpush %v1865_v56  ;;  %v221_v56 = vld [vmem:[#allocation7 + $0x170] sm:$0xff] }
 0x186   :  { %1564 = vmatpush1.bf16.msra.mxu1 %v1563_v45 }
 0x187   :  { %1566 = vmatprep.subr.bf16.mxu1 %v1565_v53 }
 0x1b6   :  { %s1848_s16 = spop %1847 }
 0x1b7   :  { %s154_s18 = smul.f32 %s1848_s16, %s1398_s14 }
 0x1b9   :  { %s156_s19 = smul.f32 %s154_s18, %s145_s6  ;;  %v164_v57 = vstv %s154_s18 }
 0x1ba   :  { %v172_v58 = vmul.f32 %v164_v57, %v2141_v4  ;;  %v1519_v4 = vpack.c.bf16 %v187_v3, %v183_v2  ;;  %v1567_v57 = vpack.c.bf16 %v221_v56, %v217_v55  ;;  %v1539_v2 = vpack.c.bf16 %v227_v0, %v223_v63  ;;  %v225_v3 = vld [vmem:[#allocation7 + $0x190] sm:$0xff]  ;;  %v251_v63 = vld [vmem:[#allocation7 + $0x260] sm:$0xff] }
 0x1bb   :  { %s157_s20 = ssub.f32 %s1399_s15, %s156_s19  ;;  %v249_v0 = vld [vmem:[#allocation7 + $0x250] sm:$0xff] }
 0x1bc   :  { %1520 = vmatpush1.bf16.msra.mxu0 %v1519_v4  ;;  %1568 = vmatpush1.bf16.msra.mxu1 %v1567_v57  ;;  %v1571_v4 = vpack.c.bf16 %v229_v5, %v225_v3  ;;  %v260_v3 = vld [vmem:[#allocation7 + $0x2a8] sm:$0xff]  ;;  %v258_v5 = vld [vmem:[#allocation7 + $0x298] sm:$0xff] }
 0x1bd   :  { %v168_v59 = vstv %s157_s20  ;;  %1522 = vmatprep.subr.bf16.mxu0 %v1521_v12  ;;  %v235_v12 = vld [vmem:[#allocation7 + $0x1e0] sm:$0xff] }
 0x1be   :  { %v174_v60 = vadd.f32 %v172_v58, %v168_v59  ;;  %v224_v58 = vld [vmem:[#allocation7 + $0x188] sm:$0xff]  ;;  %v1543_v14 = vpack.c.bf16 %v235_v12, %v231_v11  ;;  %v259_v11 = vld [vmem:[#allocation7 + $0x2a0] sm:$0xff] }
 0x1bf   :  { %v228_v59 = vld [vmem:[#allocation7 + $0x1a8] sm:$0xff] }
 0x1c0   :  { %1401 = vmatmul.mubr.msk.f32.gmra.mrb[2].mxu0 %vm89_vm0, %v174_v60  ;;  %1403 = vmatmul.mubr.msk.f32.gmra.mrb[2].mxu1 %vm89_vm0, %v174_v60  ;;  %v226_v60 = vld [vmem:[#allocation7 + $0x198] sm:$0xff]  ;;  %v1537_v61 = vpack.c.bf16 %v228_v59, %v224_v58 }
 0x1c1   :  { %651 = vmatprep.mubr.f32.mxu0 %v2043_v34  ;;  %722 = vmatprep.mubr.f32.mxu1 %v2043_v34  ;;  %v1569_v1 = vpack.c.bf16 %v230_v62, %v226_v60  ;;  %v247_v62 = vld [vmem:[#allocation7 + $0x240] sm:$0xff] }
 0x1c2   :  { %1524 = vmatpush1.bf16.msra.mxu0 %v1523_v17  ;;  %v1575_v17 = vpack.c.bf16 %v237_v16, %v233_v15  ;;  %v2199_v8 = vpack.c.bf16 %v251_v63, %v247_v62  ;;  %v257_v15 = vld [vmem:[#allocation7 + $0x290] sm:$0xff] }
 0x1c3   :  { %1526 = vmatprep.subr.bf16.mxu0 %v1525_v24  ;;  %1570 = vmatprep.subr.bf16.mxu1 %v1569_v1  ;;  %v243_v24 = vld [vmem:[#allocation7 + $0x220] sm:$0xff]  ;;  %v253_v1 = vld [vmem:[#allocation7 + $0x270] sm:$0xff] }
 0x1c4   :  { %1572 = vmatpush1.bf16.msra.mxu1 %v1571_v4  ;;  %v1547_v26 = vpack.c.bf16 %v243_v24, %v239_v23  ;;  %v262_v4 = vld [vmem:[#allocation7 + $0x2b8] sm:$0xff]  ;;  %v261_v16 = vld [vmem:[#allocation7 + $0x2b0] sm:$0xff]  ;;  %v263_v23 = vld [vmem:[#allocation7 + $0x2c0] sm:$0xff] }
 0x1c5   :  { %1574 = vmatprep.subr.bf16.mxu1 %v1573_v13  ;;  %v2215_v22 = vpack.c.bf16 %v261_v16, %v257_v15  ;;  %v267_v24 = vld [vmem:[#allocation7 + $0x2e0] sm:$0xff]  ;;  %v281_v63 = vld [vmem:[#allocation7 + $0x350] sm:$0xff] }
 0x1c6   :  { %1528 = vmatpush1.bf16.msra.mxu0 %v1527_v29  ;;  %v1579_v29 = vpack.c.bf16 %v245_v28, %v241_v27  ;;  %v265_v27 = vld [vmem:[#allocation7 + $0x2d0] sm:$0xff]  ;;  %v2227_v35 = vpack.c.bf16 %v267_v24, %v263_v23  ;;  %v302_v23 = vld [vmem:[#allocation7 + $0x3f8] sm:$0xff] }
 0x1c7   :  { %1530 = vmatprep.subr.bf16.mxu0 %v1529_v37  ;;  %v396_v37 = vlaneseq  ;;  %v269_v28 = vld [vmem:[#allocation7 + $0x2f0] sm:$0xff] }
 0x1c8   :  { %1576 = vmatpush1.bf16.msra.mxu1 %v1575_v17  ;;  %v264_v17 = vld [vmem:[#allocation7 + $0x2c8] sm:$0xff]  ;;  %v289_v16 = vld [vmem:[#allocation7 + $0x390] sm:$0xff] }
 0x1c9   :  { %1578 = vmatprep.subr.bf16.mxu1 %v1577_v25  ;;  %v2171_v38 = vshrl.u32 %v396_v37, 7  ;;  %v2219_v25 = vpack.c.bf16 %v268_v18, %v264_v17  ;;  %v2229_v37 = vpack.c.bf16 %v269_v28, %v265_v27  ;;  %v293_v17 = vld [vmem:[#allocation7 + $0x3b0] sm:$0xff]  ;;  %v296_v18 = vld [vmem:[#allocation7 + $0x3c8] sm:$0xff]  ;;  %v295_v28 = vld [vmem:[#allocation7 + $0x3c0] sm:$0xff] }
 0x1ca   :  { %1532 = vmatpush1.bf16.msra.mxu0 %v1531_v42  ;;  %v2258_v27 = vpack.c.bf16 %v293_v17, %v289_v16  ;;  %v387_v17 = vld [vmem:[#allocation10 + $0x40] sm:$0xff] }
 0x1cb   :  { %1534 = vmatprep.subr.bf16.mxu0 %v1533_v49  ;;  %v398_v39 = vsub.s32 0, %v2171_v38  ;;  %v406_v42 = vsub.s32 2, %v2171_v38  ;;  %v410_v43 = vsub.s32 3, %v2171_v38 }
 0x1cc   :  { %1580 = vmatpush1.bf16.msra.mxu1 %v1579_v29  ;;  %v272_v29 = vld [vmem:[#allocation7 + $0x308] sm:$0xff] }
 0x1cd   :  { %1614 = vmatprep.subr.bf16.mxu1 %v2167_v36  ;;  %v2179_v41 = vrot.slane %v2174_v40, %v398_v39  ;;  %v2187_v47 = vrot.slane %v2174_v40, %v406_v42  ;;  %v2192_v50 = vrot.slane %v2174_v40, %v410_v43 }
 0x1ce   :  { %1536 = vmatpush1.bf16.msra.mxu0 %v1535_v54 }
 0x1cf   :  { %1538 = vmatprep.subr.bf16.mxu0 %v1537_v61 }
 0x1d2   :  { %1540 = vmatpush1.bf16.msra.mxu0 %v1539_v2  ;;  %v256_v2 = vld [vmem:[#allocation7 + $0x288] sm:$0xff] }
 0x1d3   :  { %1542 = vmatprep.subr.bf16.mxu0 %v1541_v9  ;;  %v2201_v9 = vpack.c.bf16 %v253_v1, %v249_v0  ;;  %v2205_v13 = vpack.c.bf16 %v260_v3, %v256_v2  ;;  %v285_v0 = vld [vmem:[#allocation7 + $0x370] sm:$0xff]  ;;  %v288_v1 = vld [vmem:[#allocation7 + $0x388] sm:$0xff]  ;;  %v290_v3 = vld [vmem:[#allocation7 + $0x398] sm:$0xff] }
 0x1d4   :  { %v292_v2 = vld [vmem:[#allocation7 + $0x3a8] sm:$0xff] }
 0x1d6   :  { %1544 = vmatpush1.bf16.msra.mxu0 %v1543_v14  ;;  %v2207_v14 = vpack.c.bf16 %v262_v4, %v258_v5  ;;  %v294_v5 = vld [vmem:[#allocation7 + $0x3b8] sm:$0xff] }
 0x1d7   :  { %1546 = vmatprep.subr.bf16.mxu0 %v1545_v21  ;;  %v2213_v21 = vpack.c.bf16 %v259_v11, %v255_v10  ;;  %v291_v10 = vld [vmem:[#allocation7 + $0x3a0] sm:$0xff]  ;;  %v1601_v11 = vpack.c.bf16 %v292_v2, %v288_v1  ;;  %v2255_v15 = vpack.c.bf16 %v294_v5, %v290_v3  ;;  %v309_v1 = vld [vmem:[#allocation7 + $0x430] sm:$0xff] }
 0x1d8   :  { %v383_v5 = vld [vmem:[#allocation10 + $0x20] sm:$0xff] }
 0x1da   :  { %1548 = vmatpush1.bf16.msra.mxu0 %v1547_v26  ;;  %v2221_v26 = vpack.c.bf16 %v270_v20, %v266_v19  ;;  %v300_v19 = vld [vmem:[#allocation7 + $0x3e8] sm:$0xff]  ;;  %v298_v20 = vld [vmem:[#allocation7 + $0x3d8] sm:$0xff] }
 0x1db   :  { %1582 = vmatprep.subr.bf16.mxu0 %v2165_v33 }
 0x24b   :  { %v488_v44 = vpop.f32.mrb[0].mxu0  ;;  %v564_v45 = vpop.f32.mrb[0].mxu1 }
 0x24c   :  { %v489_v46 = vadd.f32 %v488_v44, %v2179_v41  ;;  %v490_v48 = vpop.f32.mrb[1].mxu0  ;;  %v566_v49 = vpop.f32.mrb[1].mxu1  ;;  %v565_v52 = vadd.f32 %v564_v45, %v2187_v47  ;;  %v271_v44 = vld [vmem:[#allocation7 + $0x300] sm:$0xff] }
 0x24d   :  { %v567_v53 = vadd.f32 %v566_v49, %v2192_v50  ;;  %v275_v45 = vld [vmem:[#allocation7 + $0x320] sm:$0xff]  ;;  %v2235_v48 = vpack.c.bf16 %v278_v32, %v274_v31  ;;  %v273_v49 = vld [vmem:[#allocation7 + $0x310] sm:$0xff]  ;;  %v2261_v31 = vpack.c.bf16 %v302_v23, %v298_v20  ;;  %v390_v23 = vld [vmem:[#allocation10 + $0x58] sm:$0xff] }
 0x24e   :  { %v575_v51 = vmul.f32 0.5, %v489_v46  ;;  %v2233_v46 = vpack.c.bf16 %v276_v30, %v272_v29  ;;  %v299_v29 = vld [vmem:[#allocation7 + $0x3e0] sm:$0xff]  ;;  %v1605_v30 = vpack.c.bf16 %v300_v19, %v296_v18  ;;  %v297_v32 = vld [vmem:[#allocation7 + $0x3d0] sm:$0xff]  ;;  %v388_v18 = vld [vmem:[#allocation10 + $0x48] sm:$0xff] }
 0x24f   :  { %v580_v54 = vmul.f32 0.5, %v567_v53  ;;  %v284_v53 = vld [vmem:[#allocation7 + $0x368] sm:$0xff]  ;;  %v2303_v19 = vpack.c.bf16 %v388_v18, %v387_v17  ;;  %v389_v20 = vld [vmem:[#allocation10 + $0x50] sm:$0xff] }
 0x250   :  { %1866 = vtanh.f32 %v575_v51  ;;  %v277_v51 = vld [vmem:[#allocation7 + $0x330] sm:$0xff] }
 0x251   :  { %1868 = vtanh.f32 %v565_v52  ;;  %v280_v52 = vld [vmem:[#allocation7 + $0x348] sm:$0xff] }
 0x252   :  { %1870 = vtanh.f32 %v580_v54  ;;  %v282_v54 = vld [vmem:[#allocation7 + $0x358] sm:$0xff] }
 0x25a   :  { %v1867_v55 = vpop.eup %1866 }
 0x25b   :  { %v577_v56 = vmul.f32 0.5, %v1867_v55  ;;  %v1869_v58 = vpop.eup %1868  ;;  %v286_v55 = vld [vmem:[#allocation7 + $0x378] sm:$0xff] }
 0x25c   :  { %v1871_v60 = vpop.eup %1870  ;;  %v2247_v62 = vpack.c.bf16 %v286_v55, %v282_v54  ;;  %v303_v55 = vld [vmem:[#allocation7 + $0x400] sm:$0xff] }
 0x25d   :  { %v578_v57 = vadd.f32 0.5, %v577_v56  ;;  %v582_v61 = vmul.f32 0.5, %v1871_v60  ;;  %v2239_v56 = vpack.c.bf16 %v275_v45, %v271_v44  ;;  %v283_v60 = vld [vmem:[#allocation7 + $0x360] sm:$0xff]  ;;  %v301_v44 = vld [vmem:[#allocation7 + $0x3f0] sm:$0xff]  ;;  %v304_v45 = vld [vmem:[#allocation7 + $0x408] sm:$0xff] }
 0x25e   :  { %v2264_v54 = vpack.c.bf16 %v301_v44, %v297_v32  ;;  %v393_v32 = vld [vmem:[#allocation10 + $0x70] sm:$0xff]  ;;  %v394_v44 = vld [vmem:[#allocation10 + $0x78] sm:$0xff] }
 0x25f   :  { %v2196_v59 = vmul.f32 %v1869_v58, %v578_v57  ;;  %v583_v6 = vadd.f32 0.5, %v582_v61  ;;  %v2241_v57 = vpack.c.bf16 %v277_v51, %v273_v49  ;;  %v279_v58 = vld [vmem:[#allocation7 + $0x340] sm:$0xff]  ;;  %v2245_v61 = vpack.c.bf16 %v284_v53, %v280_v52  ;;  %v308_v49 = vld [vmem:[#allocation7 + $0x428] sm:$0xff]  ;;  %v306_v51 = vld [vmem:[#allocation7 + $0x418] sm:$0xff] }
 0x260   :  { %v1599_v4 = vpack.c.bf16 %v283_v60, %v279_v58  ;;  %v310_v52 = vld [vmem:[#allocation7 + $0x438] sm:$0xff]  ;;  %v1607_v53 = vpack.c.bf16 %v299_v29, %v295_v28  ;;  %v1609_v58 = vpack.c.bf16 %v308_v49, %v304_v45  ;;  %v391_v28 = vld [vmem:[#allocation10 + $0x60] sm:$0xff]  ;;  %v2315_v45 = vpack.c.bf16 %v394_v44, %v393_v32 }
 0x261   :  { %1872 = vtanh.f32 %v2196_v59  ;;  %v2267_v60 = vpack.c.bf16 %v310_v52, %v306_v51  ;;  %v392_v29 = vld [vmem:[#allocation10 + $0x68] sm:$0xff]  ;;  %v402_v49 = vsub.s32 1, %v2171_v38 }
 0x263   :  { %v403_v51 = vrot.slane %v2174_v40, %v402_v49 }
 0x26b   :  { %v1873_v7 = vpop.eup %1872 }
 0x26c   :  { %v2203_v12 = vmul.f32 %v1873_v7, %v583_v6  ;;  %v2251_v6 = vpack.c.bf16 %v285_v0, %v281_v63  ;;  %v287_v7 = vld [vmem:[#allocation7 + $0x380] sm:$0xff]  ;;  %v305_v0 = vld [vmem:[#allocation7 + $0x410] sm:$0xff] }
 0x26d   :  { %v1603_v24 = vpack.c.bf16 %v291_v10, %v287_v7  ;;  %v307_v63 = vld [vmem:[#allocation7 + $0x420] sm:$0xff]  ;;  %v2270_v3 = vpack.c.bf16 %v309_v1, %v305_v0 }
 0x26e   :  { %652 = vmatmul.mubr.f32.vlgmr.msra.gmra.mrb[2].mxu0 %v2203_v12  ;;  %723 = vmatmul.mubr.f32.vlgmr.msra.gmra.mrb[2].mxu1 %v2203_v12  ;;  %v1611_v2 = vpack.c.bf16 %v307_v63, %v303_v55  ;;  %v385_v10 = vld [vmem:[#allocation10 + $0x30] sm:$0xff] }
 0x26f   :  { %1584 = vmatpush1.bf16.msra.mxu0 %v2199_v8  ;;  %1616 = vmatpush1.bf16.msra.mxu1 %v2201_v9 }
 0x270   :  { %1586 = vmatprep.subr.bf16.mxu0 %v2205_v13  ;;  %1618 = vmatprep.subr.bf16.mxu1 %v2207_v14 }
 0x271   :  { %836 = vmatprep.mubr.f32.mxu0 %v2043_v34  ;;  %906 = vmatprep.mubr.f32.mxu1 %v2043_v34 }
 0x273   :  { %1588 = vmatpush1.bf16.msra.mxu0 %v2213_v21  ;;  %1620 = vmatpush1.bf16.msra.mxu1 %v2215_v22 }
 0x274   :  { %1590 = vmatprep.subr.bf16.mxu0 %v2219_v25  ;;  %1622 = vmatprep.subr.bf16.mxu1 %v2221_v26 }
 0x277   :  { %1592 = vmatpush1.bf16.msra.mxu0 %v2227_v35  ;;  %1624 = vmatpush1.bf16.msra.mxu1 %v2229_v37 }
 0x278   :  { %1594 = vmatprep.subr.bf16.mxu0 %v2233_v46  ;;  %1626 = vmatprep.subr.bf16.mxu1 %v2235_v48 }
 0x27b   :  { %1596 = vmatpush1.bf16.msra.mxu0 %v2239_v56  ;;  %1628 = vmatpush1.bf16.msra.mxu1 %v2241_v57 }
 0x27c   :  { %1598 = vmatprep.subr.bf16.mxu0 %v2245_v61  ;;  %1630 = vmatprep.subr.bf16.mxu1 %v2247_v62 }
 0x27f   :  { %1600 = vmatpush1.bf16.msra.mxu0 %v1599_v4  ;;  %1632 = vmatpush1.bf16.msra.mxu1 %v2251_v6 }
 0x280   :  { %1602 = vmatprep.subr.bf16.mxu0 %v1601_v11  ;;  %1634 = vmatprep.subr.bf16.mxu1 %v2255_v15 }
 0x283   :  { %1604 = vmatpush1.bf16.msra.mxu0 %v1603_v24  ;;  %1636 = vmatpush1.bf16.msra.mxu1 %v2258_v27 }
 0x284   :  { %1606 = vmatprep.subr.bf16.mxu0 %v1605_v30  ;;  %1638 = vmatprep.subr.bf16.mxu1 %v2261_v31 }
 0x287   :  { %1608 = vmatpush1.bf16.msra.mxu0 %v1607_v53  ;;  %1640 = vmatpush1.bf16.msra.mxu1 %v2264_v54 }
 0x288   :  { %1610 = vmatprep.subr.bf16.mxu0 %v1609_v58  ;;  %1642 = vmatprep.subr.bf16.mxu1 %v2267_v60 }
 0x28b   :  { %1612 = vmatpush1.bf16.msra.mxu0 %v1611_v2  ;;  %1644 = vmatpush1.bf16.msra.mxu1 %v2270_v3 }
 0x28c   :  { %1670 = vmatprep.subr.bf16.mxu1 %v2165_v33  ;;  %v379_v33 = vld [vmem:[#allocation10] sm:$0xff] }
 0x28e   :  { %837 = vmatmul.mubr.f32.vlgmr.msra.gmra.mrb[4].mxu0 %v2203_v12  ;;  %907 = vmatmul.mubr.f32.vlgmr.msra.gmra.mrb[4].mxu1 %v2203_v12 }
 0x28f   :  { %1672 = vmatpush1.bf16.msra.mxu1 %v2199_v8  ;;  %1064 = vmatprep.mubr.f32.mxu1 %v2043_v34  ;;  %v380_v8 = vld [vmem:[#allocation10 + $0x8] sm:$0xff] }
 0x290   :  { %1674 = vmatprep.subr.bf16.mxu1 %v2205_v13  ;;  %v2286_v12 = vpack.c.bf16 %v380_v8, %v379_v33  ;;  %v2044_v13 = vmov 0.0|0.0   ;;  %1471 = vmatprep.mubr.msk.f32.mxu0 %vm2045_vm1, %v2043_v34 }
 0x291   :  { %1645 = vmatprep.subr.bf16.mxu0 %v2044_v13 }
 0x292   :  { %1647 = vmatpush3.bf16.msra.mxu0 %v2286_v12 }
 0x293   :  { %1676 = vmatpush1.bf16.msra.mxu1 %v2213_v21  ;;  %v312_v21 = vld [vmem:[#allocation7 + $0x448] sm:$0xff]  ;;  %1648 = vmatprep.subr.bf16.mxu0 %v2044_v13 }
 0x294   :  { %1678 = vmatprep.subr.bf16.mxu1 %v2219_v25  ;;  %v316_v25 = vld [vmem:[#allocation7 + $0x468] sm:$0xff] }
 0x297   :  { %1680 = vmatpush1.bf16.msra.mxu1 %v2227_v35  ;;  %v1733_v35 = vpack.c.bf16 %v316_v25, %v312_v21 }
 0x298   :  { %1682 = vmatprep.subr.bf16.mxu1 %v2233_v46  ;;  %v381_v46 = vld [vmem:[#allocation10 + $0x10] sm:$0xff] }
 0x29b   :  { %1684 = vmatpush1.bf16.msra.mxu1 %v2239_v56  ;;  %v382_v56 = vld [vmem:[#allocation10 + $0x18] sm:$0xff] }
 0x29c   :  { %1686 = vmatprep.subr.bf16.mxu1 %v2245_v61  ;;  %v2291_v61 = vpack.c.bf16 %v382_v56, %v381_v46 }
 0x29e   :  { %1650 = vmatpush3.bf16.msra.mxu0 %v2291_v61 }
 0x29f   :  { %1688 = vmatpush1.bf16.msra.mxu1 %v1599_v4  ;;  %1651 = vmatprep.subr.bf16.mxu0 %v2044_v13  ;;  %v384_v4 = vld [vmem:[#allocation10 + $0x28] sm:$0xff] }
 0x2a0   :  { %1690 = vmatprep.subr.bf16.mxu1 %v1601_v11  ;;  %v2295_v7 = vpack.c.bf16 %v384_v4, %v383_v5  ;;  %v386_v11 = vld [vmem:[#allocation10 + $0x38] sm:$0xff] }
 0x2a1   :  { %v2299_v16 = vpack.c.bf16 %v386_v11, %v385_v10  ;;  %v2329_v11 = vld [vmem:[#allocation9 + $0x1] ss:$4 sm:$0xf] }
 0x2a2   :  { %1653 = vmatpush3.bf16.msra.mxu0 %v2295_v7 }
 0x2a3   :  { %1692 = vmatpush1.bf16.msra.mxu1 %v1603_v24  ;;  %1654 = vmatprep.subr.bf16.mxu0 %v2044_v13  ;;  %v2307_v24 = vpack.c.bf16 %v390_v23, %v389_v20  ;;  %v311_v23 = vld [vmem:[#allocation7 + $0x440] sm:$0xff] }
 0x2a4   :  { %1694 = vmatprep.subr.bf16.mxu1 %v1605_v30  ;;  %v2311_v30 = vpack.c.bf16 %v392_v29, %v391_v28  ;;  %v315_v28 = vld [vmem:[#allocation7 + $0x460] sm:$0xff] }
 0x2a6   :  { %1656 = vmatpush3.bf16.msra.mxu0 %v2299_v16 }
 0x2a7   :  { %1696 = vmatpush1.bf16.msra.mxu1 %v1607_v53  ;;  %1657 = vmatprep.subr.bf16.mxu0 %v2044_v13 }
 0x2a8   :  { %1698 = vmatprep.subr.bf16.mxu1 %v1609_v58 }
 0x2aa   :  { %1659 = vmatpush3.bf16.msra.mxu0 %v2303_v19 }
 0x2ab   :  { %1700 = vmatpush1.bf16.msra.mxu1 %v1611_v2  ;;  %1660 = vmatprep.subr.bf16.mxu0 %v2044_v13 }
 0x2ac   :  { %1734 = vmatprep.subr.bf16.mxu1 %v1733_v35 }
 0x2ae   :  { %1662 = vmatpush3.bf16.msra.mxu0 %v2307_v24 }
 0x2af   :  { %1663 = vmatprep.subr.bf16.mxu0 %v2044_v13 }
 0x2b2   :  { %1665 = vmatpush3.bf16.msra.mxu0 %v2311_v30 }
 0x2b3   :  { %1666 = vmatprep.subr.bf16.mxu0 %v2044_v13 }
 0x2b6   :  { %1668 = vmatpush3.bf16.msra.mxu0 %v2315_v45 }
 0x2b7   :  { %1702 = vmatprep.subr.bf16.mxu0 %v2167_v36 }
 0x341   :  { %v653_v52 = vpop.f32.mrb[2].mxu0  ;;  %v724_v53 = vpop.f32.mrb[2].mxu1 }
 0x342   :  { %v1821_v55 = vadd.f32 %v653_v52, %v2179_v41  ;;  %v655_v58 = vpop.f32.mrb[3].mxu0  ;;  %v726_v63 = vpop.f32.mrb[3].mxu1  ;;  %v1823_v36 = vadd.f32 %v724_v53, %v2187_v47  ;;  %v324_v52 = vld [vmem:[#allocation7 + $0x4a8] sm:$0xff] }
 0x343   :  { %v1822_v0 = vadd.f32 %v655_v58, %v403_v51  ;;  %v1824_v33 = vadd.f32 %v726_v63, %v2192_v50  ;;  %v2334_v50 = vrot.slane %v2329_v11, %v398_v39  ;;  %v320_v51 = vld [vmem:[#allocation7 + $0x488] sm:$0xff]  ;;  %v2345_v39 = vrot.slane %v2329_v11, %v410_v43 }
 0x344   :  { %v733_v1 = vmul.f32 0.5, %v1821_v55  ;;  %v1735_v63 = vpack.c.bf16 %v315_v28, %v311_v23 }
 0x345   :  { %v742_v2 = vmul.f32 0.5, %v1822_v0  ;;  %v738_v8 = vmul.f32 0.5, %v1824_v33  ;;  %v328_v33 = vld [vmem:[#allocation7 + $0x4c8] sm:$0xff] }
 0x346   :  { %1874 = vtanh.f32 %v733_v1  ;;  %v1737_v1 = vpack.c.bf16 %v324_v52, %v320_v51  ;;  %v352_v51 = vld [vmem:[#allocation7 + $0x588] sm:$0xff] }
 0x347   :  { %1876 = vtanh.f32 %v742_v2  ;;  %v319_v2 = vld [vmem:[#allocation7 + $0x480] sm:$0xff]  ;;  %v356_v52 = vld [vmem:[#allocation7 + $0x5a8] sm:$0xff] }
 0x348   :  { %1878 = vtanh.f32 %v1823_v36  ;;  %v323_v36 = vld [vmem:[#allocation7 + $0x4a0] sm:$0xff] }
 0x349   :  { %1880 = vtanh.f32 %v738_v8  ;;  %v332_v8 = vld [vmem:[#allocation7 + $0x4e8] sm:$0xff]  ;;  %v1739_v43 = vpack.c.bf16 %v323_v36, %v319_v2  ;;  %v351_v2 = vld [vmem:[#allocation7 + $0x580] sm:$0xff] }
 0x34a   :  { %v355_v36 = vld [vmem:[#allocation7 + $0x5a0] sm:$0xff] }
 0x350   :  { %v1875_v21 = vpop.eup %1874 }
 0x351   :  { %v1877_v25 = vpop.eup %1876  ;;  %v735_v40 = vmul.f32 0.5, %v1875_v21 }
 0x352   :  { %v744_v35 = vmul.f32 0.5, %v1877_v25  ;;  %v1879_v41 = vpop.eup %1878  ;;  %v1741_v25 = vpack.c.bf16 %v332_v8, %v328_v33  ;;  %v364_v33 = vld [vmem:[#allocation7 + $0x5e8] sm:$0xff]  ;;  %v1755_v8 = vpack.c.bf16 %v355_v36, %v351_v2 }
 0x353   :  { %v736_v46 = vadd.f32 0.5, %v735_v40  ;;  %v1881_v47 = vpop.eup %1880  ;;  %v327_v40 = vld [vmem:[#allocation7 + $0x4c0] sm:$0xff] }
 0x354   :  { %v745_v56 = vadd.f32 0.5, %v744_v35  ;;  %v740_v17 = vmul.f32 0.5, %v1881_v47  ;;  %v331_v35 = vld [vmem:[#allocation7 + $0x4e0] sm:$0xff] }
 0x355   :  { %v747_v5 = vmul.f32 %v1879_v41, %v736_v46  ;;  %v336_v46 = vld [vmem:[#allocation7 + $0x508] sm:$0xff]  ;;  %v339_v47 = vld [vmem:[#allocation7 + $0x520] sm:$0xff] }
 0x356   :  { %v746_v4 = vmul.f32 %v745_v56, %v2196_v59  ;;  %v2340_v59 = vrot.slane %v2329_v11, %v406_v42  ;;  %v741_v53 = vadd.f32 0.5, %v740_v17  ;;  %v340_v41 = vld [vmem:[#allocation7 + $0x528] sm:$0xff] }
 0x357   :  { %v344_v17 = vld [vmem:[#allocation7 + $0x548] sm:$0xff] }
 0x358   :  { %v748_v10 = vadd.f32 %v747_v5, %v746_v4  ;;  %v1743_v5 = vpack.c.bf16 %v331_v35, %v327_v40  ;;  %v1745_v4 = vpack.c.bf16 %v340_v41, %v336_v46  ;;  %v363_v40 = vld [vmem:[#allocation7 + $0x5e0] sm:$0xff]  ;;  %v368_v35 = vld [vmem:[#allocation7 + $0x608] sm:$0xff] }
 0x359   :  { %v372_v46 = vld [vmem:[#allocation7 + $0x628] sm:$0xff] }
 0x35a   :  { %1882 = vtanh.f32 %v748_v10  ;;  %v335_v10 = vld [vmem:[#allocation7 + $0x500] sm:$0xff] }
 0x35b   :  { %v1747_v23 = vpack.c.bf16 %v339_v47, %v335_v10  ;;  %v371_v10 = vld [vmem:[#allocation7 + $0x620] sm:$0xff] }
 0x361   :  { %v838_v18 = vpop.f32.mrb[4].mxu0  ;;  %v908_v20 = vpop.f32.mrb[4].mxu1 }
 0x362   :  { %v839_v29 = vadd.f32 %v838_v18, %v2334_v50  ;;  %v840_v32 = vpop.f32.mrb[5].mxu0  ;;  %v910_v44 = vpop.f32.mrb[5].mxu1  ;;  %v909_v42 = vadd.f32 %v908_v20, %v2340_v59  ;;  %v348_v18 = vld [vmem:[#allocation7 + $0x568] sm:$0xff] }
 0x363   :  { %v911_v21 = vadd.f32 %v910_v44, %v2345_v39  ;;  %v343_v32 = vld [vmem:[#allocation7 + $0x540] sm:$0xff] }
 0x364   :  { %v1883_v55 = vpop.eup %1882  ;;  %v913_v58 = vmul.f32 0.5, %v839_v29  ;;  %v1749_v29 = vpack.c.bf16 %v348_v18, %v344_v17  ;;  %v347_v44 = vld [vmem:[#allocation7 + $0x560] sm:$0xff] }
 0x365   :  { %v2347_v0 = vmul.f32 %v1883_v55, %v741_v53  ;;  %v918_v56 = vmul.f32 0.5, %v911_v21 }
 0x366   :  { %1884 = vtanh.f32 %v913_v58  ;;  %v1751_v58 = vpack.c.bf16 %v347_v44, %v343_v32  ;;  %v354_v32 = vld [vmem:[#allocation7 + $0x598] sm:$0xff] }
 0x367   :  { %1065 = vmatmul.mubr.f32.vlgmr.msra.gmra.mrb[6].mxu1 %v2347_v0  ;;  %1886 = vtanh.f32 %v909_v42  ;;  %v360_v42 = vld [vmem:[#allocation7 + $0x5c8] sm:$0xff]  ;;  %v358_v44 = vld [vmem:[#allocation7 + $0x5b8] sm:$0xff] }
 0x368   :  { %1736 = vmatpush1.bf16.msra.mxu1 %v1735_v63  ;;  %1206 = vmatprep.mubr.f32.mxu1 %v2043_v34  ;;  %1888 = vtanh.f32 %v918_v56 }
 0x369   :  { %1738 = vmatprep.subr.bf16.mxu1 %v1737_v1  ;;  %v1753_v1 = vpack.c.bf16 %v356_v52, %v352_v51  ;;  %v1785_v52 = vpack.c.bf16 %v358_v44, %v354_v32 }
 0x36c   :  { %1740 = vmatpush1.bf16.msra.mxu1 %v1739_v43  ;;  %v1757_v43 = vpack.c.bf16 %v364_v33, %v360_v42  ;;  %v361_v42 = vld [vmem:[#allocation7 + $0x5d0] sm:$0xff] }
 0x36d   :  { %1742 = vmatprep.subr.bf16.mxu1 %v1741_v25  ;;  %v359_v25 = vld [vmem:[#allocation7 + $0x5c0] sm:$0xff]  ;;  %v365_v33 = vld [vmem:[#allocation7 + $0x5f0] sm:$0xff] }
 0x36e   :  { %v1759_v56 = vpack.c.bf16 %v363_v40, %v359_v25  ;;  %v369_v40 = vld [vmem:[#allocation7 + $0x610] sm:$0xff] }
 0x370   :  { %v1885_v20 = vpop.eup %1884  ;;  %1744 = vmatpush1.bf16.msra.mxu1 %v1743_v5  ;;  %v1761_v5 = vpack.c.bf16 %v372_v46, %v368_v35  ;;  %v373_v35 = vld [vmem:[#allocation7 + $0x630] sm:$0xff] }
 0x371   :  { %v915_v28 = vmul.f32 0.5, %v1885_v20  ;;  %1746 = vmatprep.subr.bf16.mxu1 %v1745_v4  ;;  %v1887_v55 = vpop.eup %1886  ;;  %v367_v4 = vld [vmem:[#allocation7 + $0x600] sm:$0xff]  ;;  %v1795_v46 = vpack.c.bf16 %v373_v35, %v369_v40 }
 0x372   :  { %v1889_v21 = vpop.eup %1888  ;;  %v1763_v17 = vpack.c.bf16 %v371_v10, %v367_v4 }
 0x373   :  { %v916_v53 = vadd.f32 0.5, %v915_v28  ;;  %v920_v41 = vmul.f32 0.5, %v1889_v21  ;;  %v374_v21 = vld [vmem:[#allocation7 + $0x638] sm:$0xff] }
 0x374   :  { %1748 = vmatpush1.bf16.msra.mxu1 %v1747_v23  ;;  %v346_v23 = vld [vmem:[#allocation7 + $0x558] sm:$0xff] }
 0x375   :  { %v2353_v63 = vmul.f32 %v1887_v55, %v916_v53  ;;  %1750 = vmatprep.subr.bf16.mxu1 %v1749_v29  ;;  %v921_v47 = vadd.f32 0.5, %v920_v41  ;;  %v345_v29 = vld [vmem:[#allocation7 + $0x550] sm:$0xff]  ;;  %v1404_v41 = vld [vmem:[#allocation9 + $0x2] ss:$0 sm:$0xff] }
 0x376   :  { %v353_v53 = vld [vmem:[#allocation7 + $0x590] sm:$0xff] }
 0x377   :  { %1890 = vtanh.f32 %v2353_v63  ;;  %v357_v55 = vld [vmem:[#allocation7 + $0x5b0] sm:$0xff] }
 0x378   :  { %1752 = vmatpush1.bf16.msra.mxu1 %v1751_v58  ;;  %v362_v58 = vld [vmem:[#allocation7 + $0x5d8] sm:$0xff]  ;;  %v1787_v2 = vpack.c.bf16 %v357_v55, %v353_v53 }
 0x379   :  { %1754 = vmatprep.subr.bf16.mxu1 %v1753_v1  ;;  %v366_v1 = vld [vmem:[#allocation7 + $0x5f8] sm:$0xff] }
 0x37a   :  { %v1789_v36 = vpack.c.bf16 %v366_v1, %v362_v58 }
 0x37c   :  { %1756 = vmatpush1.bf16.msra.mxu1 %v1755_v8  ;;  %v370_v8 = vld [vmem:[#allocation7 + $0x618] sm:$0xff] }
 0x37d   :  { %1758 = vmatprep.subr.bf16.mxu1 %v1757_v43  ;;  %v1791_v43 = vpack.c.bf16 %v365_v33, %v361_v42  ;;  %v1793_v25 = vpack.c.bf16 %v374_v21, %v370_v8 }
 0x380   :  { %1760 = vmatpush1.bf16.msra.mxu1 %v1759_v56 }
 0x381   :  { %v1891_v18 = vpop.eup %1890  ;;  %1762 = vmatprep.subr.bf16.mxu1 %v1761_v5 }
 0x382   :  { %v2356_v20 = vmul.f32 %v1891_v18, %v921_v47 }
 0x384   :  { %1472 = vmatmul.mubr.f32.vlgmr.msra.gmra.mrb[6].mxu0 %v2356_v20  ;;  %1764 = vmatpush1.bf16.msra.mxu1 %v1763_v17  ;;  %v759_v17 = vrot.slane %v2329_v11, %v402_v49 }
 0x385   :  { %1704 = vmatpush1.bf16.msra.mxu0 %v2201_v9  ;;  %1135 = vmatprep.mubr.f32.mxu0 %v2043_v34  ;;  %v314_v9 = vld [vmem:[#allocation7 + $0x458] sm:$0xff] }
 0x386   :  { %1706 = vmatprep.subr.bf16.mxu0 %v2207_v14  ;;  %1797 = vmatprep.subr.bf16.mxu1 %v2044_v13  ;;  %v318_v14 = vld [vmem:[#allocation7 + $0x478] sm:$0xff] }
 0x387   :  { %1207 = vmatmul.mubr.f32.vlgmr.msra.gmra.mrb[6].mxu1 %v2356_v20 }
 0x388   :  { %1799 = vmatpush3.bf16.msra.mxu1 %v2286_v12  ;;  %1506 = vmatprep.mubr.msk.f32.mxu1 %vm2045_vm1, %v2043_v34 }
 0x389   :  { %1708 = vmatpush1.bf16.msra.mxu0 %v2215_v22  ;;  %1800 = vmatprep.subr.bf16.mxu1 %v2044_v13  ;;  %v1765_v22 = vpack.c.bf16 %v318_v14, %v314_v9 }
 0x38a   :  { %1710 = vmatprep.subr.bf16.mxu0 %v2221_v26  ;;  %v313_v26 = vld [vmem:[#allocation7 + $0x450] sm:$0xff] }
 0x38c   :  { %1802 = vmatpush3.bf16.msra.mxu1 %v2291_v61  ;;  %v333_v61 = vld [vmem:[#allocation7 + $0x4f0] sm:$0xff] }
 0x38d   :  { %1712 = vmatpush1.bf16.msra.mxu0 %v2229_v37  ;;  %1803 = vmatprep.subr.bf16.mxu1 %v2044_v13  ;;  %v317_v37 = vld [vmem:[#allocation7 + $0x470] sm:$0xff] }
 0x38e   :  { %1714 = vmatprep.subr.bf16.mxu0 %v2235_v48  ;;  %v322_v48 = vld [vmem:[#allocation7 + $0x498] sm:$0xff] }
 0x390   :  { %1805 = vmatpush3.bf16.msra.mxu1 %v2295_v7  ;;  %v338_v7 = vld [vmem:[#allocation7 + $0x518] sm:$0xff] }
 0x391   :  { %1716 = vmatpush1.bf16.msra.mxu0 %v2241_v57  ;;  %1806 = vmatprep.subr.bf16.mxu1 %v2044_v13  ;;  %v326_v57 = vld [vmem:[#allocation7 + $0x4b8] sm:$0xff] }
 0x392   :  { %1718 = vmatprep.subr.bf16.mxu0 %v2247_v62  ;;  %v1767_v62 = vpack.c.bf16 %v317_v37, %v313_v26 }
 0x394   :  { %1808 = vmatpush3.bf16.msra.mxu1 %v2299_v16 }
 0x395   :  { %1720 = vmatpush1.bf16.msra.mxu0 %v2251_v6  ;;  %1809 = vmatprep.subr.bf16.mxu1 %v2044_v13  ;;  %v1769_v6 = vpack.c.bf16 %v326_v57, %v322_v48 }
 0x396   :  { %1722 = vmatprep.subr.bf16.mxu0 %v2255_v15  ;;  %v321_v15 = vld [vmem:[#allocation7 + $0x490] sm:$0xff] }
 0x398   :  { %1811 = vmatpush3.bf16.msra.mxu1 %v2303_v19 }
 0x399   :  { %1724 = vmatpush1.bf16.msra.mxu0 %v2258_v27  ;;  %1812 = vmatprep.subr.bf16.mxu1 %v2044_v13  ;;  %v325_v27 = vld [vmem:[#allocation7 + $0x4b0] sm:$0xff] }
 0x39a   :  { %1726 = vmatprep.subr.bf16.mxu0 %v2261_v31  ;;  %v330_v31 = vld [vmem:[#allocation7 + $0x4d8] sm:$0xff] }
 0x39c   :  { %1814 = vmatpush3.bf16.msra.mxu1 %v2307_v24  ;;  %v337_v24 = vld [vmem:[#allocation7 + $0x510] sm:$0xff] }
 0x39d   :  { %1728 = vmatpush1.bf16.msra.mxu0 %v2264_v54  ;;  %1815 = vmatprep.subr.bf16.mxu1 %v2044_v13  ;;  %v334_v54 = vld [vmem:[#allocation7 + $0x4f8] sm:$0xff] }
 0x39e   :  { %1730 = vmatprep.subr.bf16.mxu0 %v2267_v60  ;;  %v1771_v60 = vpack.c.bf16 %v325_v27, %v321_v15  ;;  %v1773_v12 = vpack.c.bf16 %v334_v54, %v330_v31 }
 0x3a0   :  { %1817 = vmatpush3.bf16.msra.mxu1 %v2311_v30  ;;  %v341_v30 = vld [vmem:[#allocation7 + $0x530] sm:$0xff] }
 0x3a1   :  { %1732 = vmatpush1.bf16.msra.mxu0 %v2270_v3  ;;  %1818 = vmatprep.subr.bf16.mxu1 %v2044_v13  ;;  %v329_v3 = vld [vmem:[#allocation7 + $0x4d0] sm:$0xff]  ;;  %v342_v13 = vld [vmem:[#allocation7 + $0x538] sm:$0xff] }
 0x3a2   :  { %1766 = vmatprep.subr.bf16.mxu0 %v1765_v22  ;;  %v1775_v16 = vpack.c.bf16 %v333_v61, %v329_v3  ;;  %v1777_v19 = vpack.c.bf16 %v342_v13, %v338_v7 }
 0x3a4   :  { %1136 = vmatmul.mubr.f32.vlgmr.msra.gmra.mrb[8].mxu0 %v2347_v0  ;;  %1820 = vmatpush3.bf16.msra.mxu1 %v2315_v45  ;;  %v350_v0 = vld [vmem:[#allocation7 + $0x578] sm:$0xff]  ;;  %v1779_v45 = vpack.c.bf16 %v341_v30, %v337_v24 }
 0x3a5   :  { %1768 = vmatpush1.bf16.msra.mxu0 %v1767_v62  ;;  %1277 = vmatprep.mubr.f32.mxu0 %v2043_v34  ;;  %v1781_v28 = vpack.c.bf16 %v350_v0, %v346_v23  ;;  %v349_v34 = vld [vmem:[#allocation7 + $0x570] sm:$0xff] }
 0x3a6   :  { %1770 = vmatprep.subr.bf16.mxu0 %v1769_v6  ;;  %v1783_v51 = vpack.c.bf16 %v349_v34, %v345_v29 }
 0x3a9   :  { %1772 = vmatpush1.bf16.msra.mxu0 %v1771_v60 }
 0x3aa   :  { %1774 = vmatprep.subr.bf16.mxu0 %v1773_v12 }
 0x3ad   :  { %1776 = vmatpush1.bf16.msra.mxu0 %v1775_v16 }
 0x3ae   :  { %1778 = vmatprep.subr.bf16.mxu0 %v1777_v19 }
 0x3b1   :  { %1780 = vmatpush1.bf16.msra.mxu0 %v1779_v45 }
 0x3b2   :  { %1782 = vmatprep.subr.bf16.mxu0 %v1781_v28 }
 0x3b5   :  { %1784 = vmatpush1.bf16.msra.mxu0 %v1783_v51 }
 0x3b6   :  { %1786 = vmatprep.subr.bf16.mxu0 %v1785_v52 }
 0x3b9   :  { %1788 = vmatpush1.bf16.msra.mxu0 %v1787_v2 }
 0x3ba   :  { %1790 = vmatprep.subr.bf16.mxu0 %v1789_v36 }
 0x3bd   :  { %1792 = vmatpush1.bf16.msra.mxu0 %v1791_v43 }
 0x3be   :  { %1794 = vmatprep.subr.bf16.mxu0 %v1793_v25 }
 0x3c1   :  { %1796 = vmatpush1.bf16.msra.mxu0 %v1795_v46 }
 0x3c4   :  { %1278 = vmatmul.mubr.f32.vlgmr.msra.gmra.mrb[8].mxu0 %v2356_v20 }
 0x457   :  { %v995_v56 = vpop.f32.mrb[6].mxu0 }
 0x458   :  { %v996_v5 = vadd.f32 %v1404_v41, %v995_v56  ;;  %v1473_v4 = vpop.f32.mrb[7].mxu0 }
 0x45a   :  { %999 = vst [vmem:[#allocation12] sm:$0xff] %v996_v5  ;;  %v1208_v10 = vpop.f32.mrb[6].mxu1 }
 0x45b   :  { %v1210_v47 = vpop.f32.mrb[7].mxu1  ;;  %v1825_v9 = vadd.f32 %v1208_v10, %v2334_v50 }
 0x45c   :  { %v1826_v18 = vadd.f32 %v1210_v47, %v759_v17 }
 0x45d   :  { %v1288_v22 = vmul.f32 0.5, %v1825_v9 }
 0x45e   :  { %v1297_v14 = vmul.f32 0.5, %v1826_v18 }
 0x460   :  { %1892 = vtanh.f32 %v1297_v14 }
 0x461   :  { %1894 = vtanh.f32 %v1288_v22 }
 0x46a   :  { %v1893_v57 = vpop.eup %1892 }
 0x46b   :  { %v1895_v62 = vpop.eup %1894  ;;  %v1299_v6 = vmul.f32 0.5, %v1893_v57 }
 0x46c   :  { %v1290_v15 = vmul.f32 0.5, %v1895_v62 }
 0x46d   :  { %v1300_v49 = vadd.f32 0.5, %v1299_v6 }
 0x46e   :  { %v1291_v11 = vadd.f32 0.5, %v1290_v15 }
 0x46f   :  { %v1301_v27 = vmul.f32 %v1300_v49, %v2353_v63 }
 0x497   :  { %v1279_v26 = vpop.f32.mrb[8].mxu0 }
 0x498   :  { %v1827_v20 = vadd.f32 %v1279_v26, %v2340_v59  ;;  %v1281_v37 = vpop.f32.mrb[9].mxu0 }
 0x499   :  { %v1828_v48 = vadd.f32 %v1281_v37, %v2345_v39 }
 0x49a   :  { %1896 = vtanh.f32 %v1827_v20 }
 0x49b   :  { %v1293_v38 = vmul.f32 0.5, %v1828_v48 }
 0x49d   :  { %1898 = vtanh.f32 %v1293_v38 }
 0x4a4   :  { %v1897_v50 = vpop.eup %1896 }
 0x4a5   :  { %v1302_v31 = vmul.f32 %v1897_v50, %v1291_v11 }
 0x4a7   :  { %v1303_v54 = vadd.f32 %v1302_v31, %v1301_v27  ;;  %v1899_v60 = vpop.eup %1898 }
 0x4a8   :  { %v1295_v59 = vmul.f32 0.5, %v1899_v60 }
 0x4a9   :  { %1900 = vtanh.f32 %v1303_v54 }
 0x4aa   :  { %v1296_v12 = vadd.f32 0.5, %v1295_v59 }
 0x4b3   :  { %v1901_v3 = vpop.eup %1900 }
 0x4b4   :  { %v1305_v39 = vmul.f32 %v1901_v3, %v1296_v12 }
 0x4b6   :  { %1507 = vmatmul.mubr.f32.vlgmr.msra.gmra.mrb[8].mxu1 %v1305_v39 }
 0x589   :  { %v1372_v61 = vpop.f32.mrb[8].mxu1 }
 0x58a   :  { %v1373_v7 = vadd.f32 %v1404_v41, %v1372_v61  ;;  %v1508_v13 = vpop.f32.mrb[9].mxu1 }
 0x58c   :  { %1376 = vst [vmem:[#allocation12 + $0x8] sm:$0xff] %v1373_v7 }
 0x58d   :  { %2013 = shalt.err (!%p2010_p13)
}
 0x58e   :  { %s2014_s24 = scalar_lea.hbm %s2424_s5, 256 }
 0x58f   :  { %p2015_p0 = scmp.ne.s32.totalorder %s2424_s5, %s2014_s24  ;;  %p2018_p1 = scmp.lt.u32.totalorder %s2014_s24, %s2424_s5 }
 0x591   :  { %p2020_p2 = pnand %p2018_p1, %p2015_p0 }
 0x593   :  { %2023 = shalt.err (!%p2020_p2)
}
 0x594   :  { %1388 = dma.vmem_to_hbm [thread:$0]  %s1383_s21, 256, %s2424_s5, [#allocation4], %s2038_s2, %s2038_s2, %s2039_s17  }
 0x595   :  { %2032 = dma.done.wait [#allocation4], 256  }
 0x596   :  { %2033 = vsyncadd [#allocation4], 4294967040 }
 0x597   :  { %1392 = vsyncpa [#allocation3], 1 }
 0x598   :  { %1393 = vsyncpa [#allocation8], 1 }
 0x599   :  { %1394 = vsyncpa [#allocation11], 1 }
 0x59a   :  { %1395 = vsyncpa [#allocation4], 1 }
 0x59b   :  { %1396 = vsyncpa [#allocation5], 1 }

</bundles_post_ra>
